<compile_context>
chip_gen: v7x
topology: tpu7x:2x2x1
jax: 0.10.0
libtpu: 0.0.40
codegen_flags: <defaults>
</compile_context>

<pallas_src>
import math

import jax
import jax.numpy as jnp
from jax.experimental import pallas as pl
from jax.experimental.pallas import tpu as pltpu

IN_DIM = 28 * 28       # 784
HID = 400              # logical hidden width
OUT = 10               # logical output width
HID_PAD = 512          # lane-dense hidden width (multiple of 128)
OUT_PAD = 128          # lane-dense output width (multiple of 128)
DEFAULT_TILE_B = 1024  # ~14 MiB resident footprint -> fits every chip's VMEM


def _round_up(x, m):
    return (x + m - 1) // m * m


def _cdiv(a, b):
    return -(-a // b)


def _device_kind():
    try:
        return jax.devices()[0].device_kind.lower()
    except Exception:
        return ""


def _tensorcores_per_chip():
    """Chips where dimension_semantics=('parallel',) shards across 2 TensorCores."""
    kind = _device_kind()
    if any(t in kind for t in ("7x", "v7", "v4", "v5p")):
        return 2
    return 1


def _elementwise_dtype():
    """bf16 VPU/EUP exists on v6e and newer; keep f32 elementwise elsewhere."""
    kind = _device_kind()
    if any(t in kind for t in ("v6", "v7", "7x")):
        return jnp.bfloat16
    return jnp.float32


def _choose_tiles(B, tile_b):
    """Balanced batch tiles: multiples of 16 rows (bf16 sublane packing),
    minimal padding, and >= 2 (core-multiple) grid steps on multi-TC chips."""
    B16 = _round_up(max(B, 1), 16)
    num_tiles = max(1, _cdiv(B16, tile_b))
    ncores = _tensorcores_per_chip()
    if ncores > 1:
        # Give every TensorCore at least one 16-row tile when the batch allows.
        num_tiles = max(num_tiles, min(ncores, B16 // 16))
        if num_tiles > 1:
            num_tiles = _round_up(num_tiles, ncores)
    TB = _round_up(_cdiv(B16, num_tiles), 16)
    Bp = num_tiles * TB
    return TB, Bp, num_tiles


def mlp_kernel(x_ref,                     # (TB, 784)  bf16  (pipelined per tile)
               w1_ref, b1_ref, g1_ref,    # (784, 512) bf16, (1, 512) ew, (1, 512) ew
               w2_ref, b2_ref, g2_ref,    # (512, 512) bf16, (1, 512) ew, (1, 512) ew
               w3_ref, b3_ref,            # (512, 128) bf16, (1, 128) f32
               o_ref):                    # (TB, 128)  f32
    b1 = b1_ref[...]
    ew = b1.dtype                         # elementwise dtype (bf16 on v6e/v7x, f32 on v5e)

    # fc1 -> ReLU -> precomputed sigmoid gate
    h1 = jnp.dot(x_ref[...], w1_ref[...], preferred_element_type=jnp.float32)
    h1 = jnp.maximum(h1.astype(ew) + b1, 0) * g1_ref[...]

    # fc2 -> ReLU -> gate
    h2 = jnp.dot(h1.astype(jnp.bfloat16), w2_ref[...],
                 preferred_element_type=jnp.float32)
    h2 = jnp.maximum(h2.astype(ew) + b2_ref[...], 0) * g2_ref[...]

    # fc3 (no activation) -> lane-dense (TB, 128) f32 store
    o_ref[...] = jnp.dot(h2.astype(jnp.bfloat16), w3_ref[...],
                         preferred_element_type=jnp.float32) + b3_ref[...]


def mlp_forward(x, s, params, *, tile_b=DEFAULT_TILE_B):
    """x: [B, 1, 28, 28] or [B, 784]; s: scalar; params from init_params()."""
    w1, b1, m1, w2, b2, m2, w3, b3 = params

    B = x.shape[0]
    x2d = x.reshape(B, -1).astype(jnp.bfloat16)                 # [B, 784] bf16

    TB, Bp, num_tiles = _choose_tiles(B, tile_b)
    if Bp != B:
        x2d = jnp.pad(x2d, ((0, Bp - B), (0, 0)))

    # Grid-invariant gates + bias dtype conversion hoisted out of the kernel.
    ew = _elementwise_dtype()
    s_f32 = jnp.asarray(s, jnp.float32)
    g1 = jax.nn.sigmoid(s_f32 * m1).astype(ew)                  # (1, 512)
    g2 = jax.nn.sigmoid(s_f32 * m2).astype(ew)                  # (1, 512)
    b1e = b1.astype(ew)
    b2e = b2.astype(ew)

    # Advisory cost estimate (helps XLA overlap this call in a larger graph).
    ew_bytes = jnp.dtype(ew).itemsize
    flops = 2 * Bp * (IN_DIM * HID_PAD + HID_PAD * HID_PAD + HID_PAD * OUT_PAD)
    bytes_accessed = (x2d.size * 2
                      + (w1.size + w2.size + w3.size) * 2
                      + (b1e.size + g1.size + b2e.size + g2.size) * ew_bytes
                      + b3.size * 4
                      + Bp * OUT_PAD * 4)
    cost = pl.CostEstimate(flops=flops, transcendentals=0,
                           bytes_accessed=bytes_accessed)

    # Weights / biases / gates use a constant index_map -> VMEM-resident across
    # the batch grid; only the x / out tiles are pipelined.
    const = lambda i: (0, 0)

    out = pl.pallas_call(
        mlp_kernel,
        out_shape=jax.ShapeDtypeStruct((Bp, OUT_PAD), jnp.float32),
        grid=(num_tiles,),
        in_specs=[
            pl.BlockSpec((TB, IN_DIM), lambda i: (i, 0)),       # x
            pl.BlockSpec((IN_DIM, HID_PAD), const),             # w1
            pl.BlockSpec((1, HID_PAD), const),                  # b1
            pl.BlockSpec((1, HID_PAD), const),                  # g1
            pl.BlockSpec((HID_PAD, HID_PAD), const),            # w2
            pl.BlockSpec((1, HID_PAD), const),                  # b2
            pl.BlockSpec((1, HID_PAD), const),                  # g2
            pl.BlockSpec((HID_PAD, OUT_PAD), const),            # w3
            pl.BlockSpec((1, OUT_PAD), const),                  # b3
        ],
        out_specs=pl.BlockSpec((TB, OUT_PAD), lambda i: (i, 0)),
        compiler_params=pltpu.CompilerParams(
            dimension_semantics=("parallel",),      # shard batch over TCs where available
            vmem_limit_bytes=32 * 1024 * 1024,
        ),
        cost_estimate=cost,
    )(x2d, w1, b1e, g1, w2, b2e, g2, w3, b3)

    return out[:B, :OUT]


def init_params(key):
    """Synthetic params matching the PyTorch module's shapes/init.

    nn.Linear default init: U(-1/sqrt(fan_in), +1/sqrt(fan_in)) for W and b.
    masks: LogNormal(0, 1).sample([400]) - 1.5 == exp(N(0,1)) - 1.5
    Weights stored as [in_features, out_features] (transposed vs. torch),
    zero-padded to lane-dense widths; matmul operands cast to bf16.
    """
    ks = jax.random.split(key, 8)

    def linear(kw, kb, fan_in, fan_out):
        bound = 1.0 / math.sqrt(fan_in)
        w = jax.random.uniform(kw, (fan_in, fan_out), jnp.float32, -bound, bound)
        b = jax.random.uniform(kb, (1, fan_out), jnp.float32, -bound, bound)
        return w, b

    w1, b1 = linear(ks[0], ks[1], IN_DIM, HID)
    w2, b2 = linear(ks[2], ks[3], HID, HID)
    w3, b3 = linear(ks[4], ks[5], HID, OUT)
    m1 = (jnp.exp(jax.random.normal(ks[6], (HID,), jnp.float32)) - 1.5).reshape(1, HID)
    m2 = (jnp.exp(jax.random.normal(ks[7], (HID,), jnp.float32)) - 1.5).reshape(1, HID)

    def pad2(a, rows, cols):
        return jnp.pad(a, ((0, rows - a.shape[0]), (0, cols - a.shape[1])))

    w1p = pad2(w1, IN_DIM, HID_PAD).astype(jnp.bfloat16)
    w2p = pad2(w2, HID_PAD, HID_PAD).astype(jnp.bfloat16)
    w3p = pad2(w3, HID_PAD, OUT_PAD).astype(jnp.bfloat16)
    b1p = pad2(b1, 1, HID_PAD)
    b2p = pad2(b2, 1, HID_PAD)
    b3p = pad2(b3, 1, OUT_PAD)
    m1p = pad2(m1, 1, HID_PAD)
    m2p = pad2(m2, 1, HID_PAD)

    # Note: zero-padded mask columns give sigmoid(0)=0.5 gates, but the matching
    # pre-activations are exactly 0 (zero-padded W/b), so the padding is inert.
    return (w1p, b1p, m1p, w2p, b2p, m2p, w3p, b3p)


def reference_forward(x, s, params, ew):
    """Pure-JAX reference of the identical (bf16-matmul, `ew`-elementwise) math."""
    w1, b1, m1, w2, b2, m2, w3, b3 = params
    B = x.shape[0]
    s_f32 = jnp.asarray(s, jnp.float32)
    g1 = jax.nn.sigmoid(s_f32 * m1).astype(ew)
    g2 = jax.nn.sigmoid(s_f32 * m2).astype(ew)
    h = x.reshape(B, -1).astype(jnp.bfloat16)
    h = jnp.dot(h, w1, preferred_element_type=jnp.float32)
    h = jnp.maximum(h.astype(ew) + b1.astype(ew), 0) * g1
    h = jnp.dot(h.astype(jnp.bfloat16), w2, preferred_element_type=jnp.float32)
    h = jnp.maximum(h.astype(ew) + b2.astype(ew), 0) * g2
    h = jnp.dot(h.astype(jnp.bfloat16), w3, preferred_element_type=jnp.float32) + b3
    return h[:, :OUT]


if __name__ == "__main__":
    key = jax.random.PRNGKey(0)
    k_x, k_p = jax.random.split(key)

    B = 2
    x = jax.random.normal(k_x, (B, 1, 28, 28), jnp.float32)    # MNIST-style input
    s = 2.0                                                    # scalar gate temperature
    params = init_params(k_p)

    out = mlp_forward(x, s, params)
    out = jax.block_until_ready(out)
    assert out.shape == (B, 10)

    ref = reference_forward(x, s, params, _elementwise_dtype())
    assert jnp.allclose(out, ref, atol=2e-2, rtol=2e-2), "mismatch vs reference"

    # TODO(synk): bf16 weights / elementwise mean ~1e-2-level differences vs an
    # exact-f32 torch module; tighten to all-f32 if bit-level parity is needed.
    print("KERNEL_OK")
</pallas_src>

<mosaic_0001>
module attributes {stable_mosaic.version = 11 : i64} {
  func.func @mlp_kernel(%arg0: i32, %arg1: memref<16x784xbf16, #tpu.memory_space<vmem>>, %arg2: memref<784x512xbf16, #tpu.memory_space<vmem>>, %arg3: memref<1x512xf32, #tpu.memory_space<vmem>>, %arg4: memref<1x512xf32, #tpu.memory_space<vmem>>, %arg5: memref<512x512xbf16, #tpu.memory_space<vmem>>, %arg6: memref<1x512xf32, #tpu.memory_space<vmem>>, %arg7: memref<1x512xf32, #tpu.memory_space<vmem>>, %arg8: memref<512x128xbf16, #tpu.memory_space<vmem>>, %arg9: memref<1x128xf32, #tpu.memory_space<vmem>>, %arg10: memref<16x128xf32, #tpu.memory_space<vmem>>) attributes {dimension_semantics = [#tpu.dimension_semantics<parallel>], iteration_bounds = array<i64: 1>, scalar_prefetch = 0 : i64, scratch_operands = 0 : i64, tpu.core_type = #tpu.core_type<tc>, window_params = [{transform_indices = @transform_0, window_bounds = array<i64: 16, 784>}, {pipeline_mode = #tpu.pipeline_mode<synchronous>, transform_indices = @transform_1, window_bounds = array<i64: 784, 512>}, {pipeline_mode = #tpu.pipeline_mode<synchronous>, transform_indices = @transform_2, window_bounds = array<i64: 1, 512>}, {pipeline_mode = #tpu.pipeline_mode<synchronous>, transform_indices = @transform_3, window_bounds = array<i64: 1, 512>}, {pipeline_mode = #tpu.pipeline_mode<synchronous>, transform_indices = @transform_4, window_bounds = array<i64: 512, 512>}, {pipeline_mode = #tpu.pipeline_mode<synchronous>, transform_indices = @transform_5, window_bounds = array<i64: 1, 512>}, {pipeline_mode = #tpu.pipeline_mode<synchronous>, transform_indices = @transform_6, window_bounds = array<i64: 1, 512>}, {pipeline_mode = #tpu.pipeline_mode<synchronous>, transform_indices = @transform_7, window_bounds = array<i64: 512, 128>}, {pipeline_mode = #tpu.pipeline_mode<synchronous>, transform_indices = @transform_8, window_bounds = array<i64: 1, 128>}, {transform_indices = @transform_9, window_bounds = array<i64: 16, 128>}]} {
    %c0 = arith.constant 0 : index
    %c0_0 = arith.constant 0 : index
    %0 = vector.load %arg3[%c0, %c0_0] : memref<1x512xf32, #tpu.memory_space<vmem>>, vector<1x512xf32>
    %c0_1 = arith.constant 0 : index
    %c0_2 = arith.constant 0 : index
    %1 = vector.load %arg1[%c0_1, %c0_2] : memref<16x784xbf16, #tpu.memory_space<vmem>>, vector<16x784xbf16>
    %c0_3 = arith.constant 0 : index
    %c0_4 = arith.constant 0 : index
    %2 = vector.load %arg2[%c0_3, %c0_4] : memref<784x512xbf16, #tpu.memory_space<vmem>>, vector<784x512xbf16>
    %cst = arith.constant dense<0.000000e+00> : vector<16x512xf32>
    %3 = tpu.matmul %1, %2, %cst {dimension_numbers = #tpu.dot_dimension_numbers<[1], [0], [0], [1], [0, 0, 1, 1], [], []>} : vector<16x784xbf16>, vector<784x512xbf16>, vector<16x512xf32> -> vector<16x512xf32>
    %4 = vector.broadcast %0 : vector<1x512xf32> to vector<16x512xf32>
    %5 = arith.addf %3, %4 : vector<16x512xf32>
    %cst_5 = arith.constant 0.000000e+00 : f32
    %6 = vector.broadcast %cst_5 : f32 to vector<16x512xf32>
    %7 = arith.maximumf %5, %6 : vector<16x512xf32>
    %c0_6 = arith.constant 0 : index
    %c0_7 = arith.constant 0 : index
    %8 = vector.load %arg4[%c0_6, %c0_7] : memref<1x512xf32, #tpu.memory_space<vmem>>, vector<1x512xf32>
    %9 = vector.broadcast %8 : vector<1x512xf32> to vector<16x512xf32>
    %10 = arith.mulf %7, %9 : vector<16x512xf32>
    %11 = arith.truncf %10 : vector<16x512xf32> to vector<16x512xbf16>
    %c0_8 = arith.constant 0 : index
    %c0_9 = arith.constant 0 : index
    %12 = vector.load %arg5[%c0_8, %c0_9] : memref<512x512xbf16, #tpu.memory_space<vmem>>, vector<512x512xbf16>
    %cst_10 = arith.constant dense<0.000000e+00> : vector<16x512xf32>
    %13 = tpu.matmul %11, %12, %cst_10 {dimension_numbers = #tpu.dot_dimension_numbers<[1], [0], [0], [1], [0, 0, 1, 1], [], []>} : vector<16x512xbf16>, vector<512x512xbf16>, vector<16x512xf32> -> vector<16x512xf32>
    %c0_11 = arith.constant 0 : index
    %c0_12 = arith.constant 0 : index
    %14 = vector.load %arg6[%c0_11, %c0_12] : memref<1x512xf32, #tpu.memory_space<vmem>>, vector<1x512xf32>
    %15 = vector.broadcast %14 : vector<1x512xf32> to vector<16x512xf32>
    %16 = arith.addf %13, %15 : vector<16x512xf32>
    %cst_13 = arith.constant 0.000000e+00 : f32
    %17 = vector.broadcast %cst_13 : f32 to vector<16x512xf32>
    %18 = arith.maximumf %16, %17 : vector<16x512xf32>
    %c0_14 = arith.constant 0 : index
    %c0_15 = arith.constant 0 : index
    %19 = vector.load %arg7[%c0_14, %c0_15] : memref<1x512xf32, #tpu.memory_space<vmem>>, vector<1x512xf32>
    %20 = vector.broadcast %19 : vector<1x512xf32> to vector<16x512xf32>
    %21 = arith.mulf %18, %20 : vector<16x512xf32>
    %22 = arith.truncf %21 : vector<16x512xf32> to vector<16x512xbf16>
    %c0_16 = arith.constant 0 : index
    %c0_17 = arith.constant 0 : index
    %23 = vector.load %arg8[%c0_16, %c0_17] : memref<512x128xbf16, #tpu.memory_space<vmem>>, vector<512x128xbf16>
    %cst_18 = arith.constant dense<0.000000e+00> : vector<16x128xf32>
    %24 = tpu.matmul %22, %23, %cst_18 {dimension_numbers = #tpu.dot_dimension_numbers<[1], [0], [0], [1], [0, 0, 1, 1], [], []>} : vector<16x512xbf16>, vector<512x128xbf16>, vector<16x128xf32> -> vector<16x128xf32>
    %c0_19 = arith.constant 0 : index
    %c0_20 = arith.constant 0 : index
    %25 = vector.load %arg9[%c0_19, %c0_20] : memref<1x128xf32, #tpu.memory_space<vmem>>, vector<1x128xf32>
    %26 = vector.broadcast %25 : vector<1x128xf32> to vector<16x128xf32>
    %27 = arith.addf %24, %26 : vector<16x128xf32>
    %c0_21 = arith.constant 0 : index
    %c0_22 = arith.constant 0 : index
    %28 = vector.load %arg10[%c0_21, %c0_22] : memref<16x128xf32, #tpu.memory_space<vmem>>, vector<16x128xf32>
    tpu.vector_store %arg10[%c0_21, %c0_22], %27 {strides = array<i32>} : memref<16x128xf32, #tpu.memory_space<vmem>>, vector<16x128xf32>,
    return
  }
  func.func @transform_0(%arg0: i32) -> (i32, i32) {
    %c0_i32 = arith.constant 0 : i32
    %c0_i32_0 = arith.constant 0 : i32
    return %arg0, %c0_i32 : i32, i32
  }
  func.func @transform_1(%arg0: i32) -> (i32, i32) {
    %c0_i32 = arith.constant 0 : i32
    %c0_i32_0 = arith.constant 0 : i32
    %c0_i32_1 = arith.constant 0 : i32
    return %c0_i32, %c0_i32_0 : i32, i32
  }
  func.func @transform_2(%arg0: i32) -> (i32, i32) {
    %c0_i32 = arith.constant 0 : i32
    %c0_i32_0 = arith.constant 0 : i32
    %c0_i32_1 = arith.constant 0 : i32
    return %c0_i32, %c0_i32_0 : i32, i32
  }
  func.func @transform_3(%arg0: i32) -> (i32, i32) {
    %c0_i32 = arith.constant 0 : i32
    %c0_i32_0 = arith.constant 0 : i32
    %c0_i32_1 = arith.constant 0 : i32
    return %c0_i32, %c0_i32_0 : i32, i32
  }
  func.func @transform_4(%arg0: i32) -> (i32, i32) {
    %c0_i32 = arith.constant 0 : i32
    %c0_i32_0 = arith.constant 0 : i32
    %c0_i32_1 = arith.constant 0 : i32
    return %c0_i32, %c0_i32_0 : i32, i32
  }
  func.func @transform_5(%arg0: i32) -> (i32, i32) {
    %c0_i32 = arith.constant 0 : i32
    %c0_i32_0 = arith.constant 0 : i32
    %c0_i32_1 = arith.constant 0 : i32
    return %c0_i32, %c0_i32_0 : i32, i32
  }
  func.func @transform_6(%arg0: i32) -> (i32, i32) {
    %c0_i32 = arith.constant 0 : i32
    %c0_i32_0 = arith.constant 0 : i32
    %c0_i32_1 = arith.constant 0 : i32
    return %c0_i32, %c0_i32_0 : i32, i32
  }
  func.func @transform_7(%arg0: i32) -> (i32, i32) {
    %c0_i32 = arith.constant 0 : i32
    %c0_i32_0 = arith.constant 0 : i32
    %c0_i32_1 = arith.constant 0 : i32
    return %c0_i32, %c0_i32_0 : i32, i32
  }
  func.func @transform_8(%arg0: i32) -> (i32, i32) {
    %c0_i32 = arith.constant 0 : i32
    %c0_i32_0 = arith.constant 0 : i32
    %c0_i32_1 = arith.constant 0 : i32
    return %c0_i32, %c0_i32_0 : i32, i32
  }
  func.func @transform_9(%arg0: i32) -> (i32, i32) {
    %c0_i32 = arith.constant 0 : i32
    %c0_i32_0 = arith.constant 0 : i32
    return %arg0, %c0_i32 : i32, i32
  }
}

</mosaic_0001>

<bundles_post_ra>
// kernel: tpu_custom_call.1
= control target key start
LH: loop header
LB: loop body
LE: loop exit
PB: predicated region body
PF: predicated region fallthrough
CT: control target
= control target key end

     0   :  { %14 = vsyncpa [#allocation3], 0  ;;  %s4388_s0 = inlined_call_operand.hbm [shape: bf16[16,784], index: 0, kind: input, shape index: {}]   ;;  %s4389_s1 = inlined_call_operand.hbm [shape: bf16[784,512], index: 1, kind: input, shape index: {}]   ;;  %s4390_s2 = inlined_call_operand.vmem [shape: f32[1,512], index: 2, kind: input, shape index: {}]   ;;  %s4391_s3 = inlined_call_operand.vmem [shape: f32[1,512], index: 3, kind: input, shape index: {}]   ;;  %s4392_s4 = inlined_call_operand.hbm [shape: bf16[512,512], index: 4, kind: input, shape index: {}]   ;;  %s4393_s5 = inlined_call_operand.vmem [shape: f32[1,512], index: 5, kind: input, shape index: {}]   ;;  %s4394_s6 = inlined_call_operand.vmem [shape: f32[1,512], index: 6, kind: input, shape index: {}]   ;;  %s4395_s7 = inlined_call_operand.hbm [shape: bf16[512,128], index: 7, kind: input, shape index: {}]   ;;  %s4396_s8 = inlined_call_operand.vmem [shape: f32[1,128], index: 8, kind: input, shape index: {}]   ;;  %s4397_s9 = inlined_call_operand.hbm [shape: f32[16,128], index: 9, kind: output, shape index: {}]  }
   0x1   :  { %15 = vsyncpa [#allocation6], 0 }
   0x2   :  { %16 = vsyncpa [#allocation9], 0 }
   0x3   :  { %17 = vsyncpa [#allocation4], 0  ;;  %s4208_s30 = smov [#allocation5]   ;;  %s4090_s13 = scalar_lea.hbm %s4389_s1, 25088 }
   0x4   :  { %s35_s10 = sshll.u32 %s4208_s30, 4  ;;  %p4091_p0 = scmp.ne.s32.totalorder %s4389_s1, %s4090_s13  ;;  %s36_s10 = int_to_ptr.vmem [resolvable:$true] %s35_s10 }
   0x5   :  { %p4094_p1 = scmp.lt.u32.totalorder %s4090_s13, %s4389_s1 }
   0x7   :  { %p4096_p2 = pnand %p4094_p1, %p4091_p0 }
   0x9   :  { %4099 = shalt.err (!%p4096_p2)
}
   0xa   :  { %s4100_s18 = scalar_lea.vmem %s36_s10, 25088  ;;  %p4105_p4 = scmp.lt.s32.totalorder %s36_s10, %s36_s10 }
   0xb   :  { %p4101_p3 = scmp.ne.s32.totalorder %s36_s10, %s4100_s18  ;;  %p4106_p5 = scmp.lt.s32.totalorder %s4100_s18, %s4100_s18 }
   0xd   :  { %p4107_p6 = por %p4106_p5, %p4105_p4 }
   0xf   :  { %p4108_p7 = pnand %p4107_p6, %p4101_p3 }
  0x11   :  { %4111 = shalt.err (!%p4108_p7)
}
  0x12   :  { %s4209_s19 = smov 256   ;;  %s4210_s20 = smov 16  }
  0x13   :  { %41 = dma.hbm_to_vmem [thread:$0]  %s4389_s1, 25088, %s36_s10, [#allocation6], %s4209_s19, %s4209_s19, %s4210_s20  }
  0x14   :  { %s4211_s23 = smov [#allocation2]   ;;  %s4112_s27 = scalar_lea.hbm %s4388_s0, 896 }
  0x15   :  { %s23_s24 = sshll.u32 %s4211_s23, 4  ;;  %p4113_p8 = scmp.ne.s32.totalorder %s4388_s0, %s4112_s27  ;;  %s24_s24 = int_to_ptr.vmem [resolvable:$true] %s23_s24 }
  0x16   :  { %p4116_p9 = scmp.lt.u32.totalorder %s4112_s27, %s4388_s0 }
  0x18   :  { %p4118_p10 = pnand %p4116_p9, %p4113_p8 }
  0x1a   :  { %4121 = shalt.err (!%p4118_p10)
}
  0x1b   :  { %s4122_s12 = scalar_lea.vmem %s24_s24, 896  ;;  %p4127_p12 = scmp.lt.s32.totalorder %s24_s24, %s24_s24 }
  0x1c   :  { %p4123_p11 = scmp.ne.s32.totalorder %s24_s24, %s4122_s12  ;;  %p4128_p13 = scmp.lt.s32.totalorder %s4122_s12, %s4122_s12 }
  0x1e   :  { %p4129_p0 = por %p4128_p13, %p4127_p12 }
  0x20   :  { %p4130_p1 = pnand %p4129_p0, %p4123_p11 }
  0x22   :  { %4133 = shalt.err (!%p4130_p1)
}
  0x23   :  { %s4212_s1 = smov 448   ;;  %s4213_s10 = smov 28  }
  0x24   :  { %29 = dma.hbm_to_vmem [thread:$0]  %s4388_s0, 896, %s24_s24, [#allocation3], %s4212_s1, %s4212_s1, %s4213_s10  }
  0x25   :  { %s4214_s15 = smov [#allocation7]   ;;  %s4215_s17 = smov [#allocation8]  }
  0x26   :  { %s51_s16 = sshll.u32 %s4214_s15, 4  ;;  %s67_s18 = sshll.u32 %s4215_s17, 4  ;;  %s52_s16 = int_to_ptr.vmem [resolvable:$true] %s51_s16  ;;  %s4299_s18 = int_to_ptr.vmem [resolvable:$true] %s67_s18 }
  0x27   :  { %s4134_s23 = scalar_lea.hbm %s4392_s4, 16384 }
  0x28   :  { %p4135_p2 = scmp.ne.s32.totalorder %s4392_s4, %s4134_s23  ;;  %p4138_p3 = scmp.lt.u32.totalorder %s4134_s23, %s4392_s4 }
  0x2a   :  { %p4140_p4 = pnand %p4138_p3, %p4135_p2 }
  0x2c   :  { %4143 = shalt.err (!%p4140_p4)
}
  0x2d   :  { %s4144_s0 = scalar_lea.vmem %s52_s16, 16384  ;;  %p4149_p6 = scmp.lt.s32.totalorder %s52_s16, %s52_s16 }
  0x2e   :  { %p4145_p5 = scmp.ne.s32.totalorder %s52_s16, %s4144_s0  ;;  %p4150_p7 = scmp.lt.s32.totalorder %s4144_s0, %s4144_s0 }
  0x30   :  { %p4151_p8 = por %p4150_p7, %p4149_p6 }
  0x32   :  { %p4152_p9 = pnand %p4151_p8, %p4145_p5 }
  0x34   :  { %4155 = shalt.err (!%p4152_p9)
}
  0x35   :  { %57 = dma.hbm_to_vmem [thread:$0]  %s4392_s4, 16384, %s52_s16, [#allocation6], %s4209_s19, %s4209_s19, %s4210_s20  }
  0x36   :  { %s4156_s12 = scalar_lea.hbm %s4395_s7, 4096 }
  0x37   :  { %p4157_p10 = scmp.ne.s32.totalorder %s4395_s7, %s4156_s12  ;;  %p4160_p11 = scmp.lt.u32.totalorder %s4156_s12, %s4395_s7 }
  0x39   :  { %p4162_p12 = pnand %p4160_p11, %p4157_p10 }
  0x3b   :  { %4165 = shalt.err (!%p4162_p12)
}
  0x3c   :  { %s4166_s15 = scalar_lea.vmem %s4299_s18, 4096  ;;  %p4171_p0 = scmp.lt.s32.totalorder %s4299_s18, %s4299_s18 }
  0x3d   :  { %p4167_p13 = scmp.ne.s32.totalorder %s4299_s18, %s4166_s15  ;;  %p4172_p1 = scmp.lt.s32.totalorder %s4166_s15, %s4166_s15 }
  0x3f   :  { %p4173_p2 = por %p4172_p1, %p4171_p0 }
  0x41   :  { %p4174_p3 = pnand %p4173_p2, %p4167_p13 }
  0x43   :  { %4177 = shalt.err (!%p4174_p3)
}
  0x44   :  { %s4216_s4 = smov 64   ;;  %s4217_s19 = smov 4  }
  0x45   :  { %73 = dma.hbm_to_vmem [thread:$0]  %s4395_s7, 4096, %s4299_s18, [#allocation9], %s4216_s4, %s4216_s4, %s4217_s19  }
  0x46   :  { %4200 = dma.done.wait [#allocation3], 896  }
  0x47   :  { %4201 = vsyncadd [#allocation3], 4294966400 }
  0x48   :  { %4202 = dma.done.wait [#allocation6], 41472  }
  0x49   :  { %4203 = vsyncadd [#allocation6], 4294925824 }
  0x4a   :  { %4204 = dma.done.wait [#allocation9], 4096  }
  0x4b   :  { %4205 = vsyncadd [#allocation9], 4294963200  ;;  %v3562_v0 = vld [vmem:[#allocation5 + $0x4] ss:$16 sps:$4 sm:$0xff]   ;;  %v3564_v1 = vld [vmem:[#allocation5 + $0xc] ss:$16 sps:$4 sm:$0xff]  }
  0x4c   :  { %1334 = vmatprep.subr.bf16.mxu0 %v3562_v0  ;;  %v3566_v2 = vld [vmem:[#allocation5] ss:$16 sps:$4 sm:$0xff]   ;;  %v3567_v3 = vld [vmem:[#allocation5 + $0x8] ss:$16 sps:$4 sm:$0xff]   ;;  %1506 = vmatprep.subr.bf16.mxu1 %v3564_v1  ;;  %v3568_v4 = vld [vmem:[#allocation5 + $0x24] ss:$16 sps:$4 sm:$0xff]  }
  0x4d   :  { %1335 = vmatpush1.bf16.msra.mxu0 %v3566_v2  ;;  %1507 = vmatpush1.bf16.msra.mxu1 %v3567_v3  ;;  %v3570_v5 = vld [vmem:[#allocation5 + $0x2c] ss:$16 sps:$4 sm:$0xff]   ;;  %v3572_v6 = vld [vmem:[#allocation5 + $0x20] ss:$16 sps:$4 sm:$0xff]   ;;  %v3573_v7 = vld [vmem:[#allocation5 + $0x28] ss:$16 sps:$4 sm:$0xff]  }
  0x4e   :  { %1336 = vmatprep.subr.bf16.mxu0 %v3568_v4  ;;  %1508 = vmatprep.subr.bf16.mxu1 %v3570_v5  ;;  %v3574_v8 = vld [vmem:[#allocation5 + $0x44] ss:$16 sps:$4 sm:$0xff]   ;;  %v3576_v9 = vld [vmem:[#allocation5 + $0x4c] ss:$16 sps:$4 sm:$0xff]   ;;  %v3578_v10 = vld [vmem:[#allocation5 + $0x40] ss:$16 sps:$4 sm:$0xff]  }
  0x4f   :  { %v3579_v11 = vld [vmem:[#allocation5 + $0x48] ss:$16 sps:$4 sm:$0xff]   ;;  %v3580_v12 = vld [vmem:[#allocation5 + $0x64] ss:$16 sps:$4 sm:$0xff]   ;;  %v3582_v13 = vld [vmem:[#allocation5 + $0x6c] ss:$16 sps:$4 sm:$0xff]  }
  0x50   :  { %v3584_v14 = vld [vmem:[#allocation5 + $0x60] ss:$16 sps:$4 sm:$0xff]   ;;  %v3585_v15 = vld [vmem:[#allocation5 + $0x68] ss:$16 sps:$4 sm:$0xff]   ;;  %v3586_v16 = vld [vmem:[#allocation5 + $0x84] ss:$16 sps:$4 sm:$0xff]  }
  0x51   :  { %1337 = vmatpush1.bf16.msra.mxu0 %v3572_v6  ;;  %1509 = vmatpush1.bf16.msra.mxu1 %v3573_v7  ;;  %v3588_v17 = vld [vmem:[#allocation5 + $0x8c] ss:$16 sps:$4 sm:$0xff]   ;;  %v3590_v18 = vld [vmem:[#allocation5 + $0x80] ss:$16 sps:$4 sm:$0xff]   ;;  %v3591_v19 = vld [vmem:[#allocation5 + $0x88] ss:$16 sps:$4 sm:$0xff]  }
  0x52   :  { %1338 = vmatprep.subr.bf16.mxu0 %v3574_v8  ;;  %1510 = vmatprep.subr.bf16.mxu1 %v3576_v9  ;;  %v3592_v20 = vld [vmem:[#allocation5 + $0xa4] ss:$16 sps:$4 sm:$0xff]   ;;  %v3594_v21 = vld [vmem:[#allocation5 + $0xac] ss:$16 sps:$4 sm:$0xff]   ;;  %v3596_v22 = vld [vmem:[#allocation5 + $0xa0] ss:$16 sps:$4 sm:$0xff]  }
  0x53   :  { %v3597_v23 = vld [vmem:[#allocation5 + $0xa8] ss:$16 sps:$4 sm:$0xff]   ;;  %v3598_v24 = vld [vmem:[#allocation5 + $0xc4] ss:$16 sps:$4 sm:$0xff]   ;;  %v3600_v25 = vld [vmem:[#allocation5 + $0xcc] ss:$16 sps:$4 sm:$0xff]  }
  0x54   :  { %v3602_v26 = vld [vmem:[#allocation5 + $0xc0] ss:$16 sps:$4 sm:$0xff]   ;;  %v3603_v27 = vld [vmem:[#allocation5 + $0xc8] ss:$16 sps:$4 sm:$0xff]   ;;  %v3604_v28 = vld [vmem:[#allocation5 + $0xe4] ss:$16 sps:$4 sm:$0xff]  }
  0x55   :  { %1339 = vmatpush1.bf16.msra.mxu0 %v3578_v10  ;;  %1511 = vmatpush1.bf16.msra.mxu1 %v3579_v11  ;;  %v3606_v29 = vld [vmem:[#allocation5 + $0xec] ss:$16 sps:$4 sm:$0xff]   ;;  %v3608_v30 = vld [vmem:[#allocation5 + $0xe0] ss:$16 sps:$4 sm:$0xff]   ;;  %v3609_v31 = vld [vmem:[#allocation5 + $0xe8] ss:$16 sps:$4 sm:$0xff]  }
  0x56   :  { %1340 = vmatprep.subr.bf16.mxu0 %v3580_v12  ;;  %1512 = vmatprep.subr.bf16.mxu1 %v3582_v13  ;;  %v3610_v32 = vld [vmem:[#allocation5 + $0x104] ss:$16 sps:$4 sm:$0xff]   ;;  %v3612_v33 = vld [vmem:[#allocation5 + $0x10c] ss:$16 sps:$4 sm:$0xff]   ;;  %v3614_v34 = vld [vmem:[#allocation5 + $0x100] ss:$16 sps:$4 sm:$0xff]  }
  0x57   :  { %v3615_v35 = vld [vmem:[#allocation5 + $0x108] ss:$16 sps:$4 sm:$0xff]   ;;  %v3616_v36 = vld [vmem:[#allocation5 + $0x124] ss:$16 sps:$4 sm:$0xff]   ;;  %v3618_v37 = vld [vmem:[#allocation5 + $0x12c] ss:$16 sps:$4 sm:$0xff]  }
  0x58   :  { %v3620_v38 = vld [vmem:[#allocation5 + $0x120] ss:$16 sps:$4 sm:$0xff]   ;;  %v3621_v39 = vld [vmem:[#allocation5 + $0x128] ss:$16 sps:$4 sm:$0xff]   ;;  %v3622_v40 = vld [vmem:[#allocation5 + $0x144] ss:$16 sps:$4 sm:$0xff]  }
  0x59   :  { %1341 = vmatpush1.bf16.msra.mxu0 %v3584_v14  ;;  %1513 = vmatpush1.bf16.msra.mxu1 %v3585_v15  ;;  %v3624_v41 = vld [vmem:[#allocation5 + $0x14c] ss:$16 sps:$4 sm:$0xff]   ;;  %v3626_v42 = vld [vmem:[#allocation5 + $0x140] ss:$16 sps:$4 sm:$0xff]   ;;  %v3627_v43 = vld [vmem:[#allocation5 + $0x148] ss:$16 sps:$4 sm:$0xff]  }
  0x5a   :  { %1342 = vmatprep.subr.bf16.mxu0 %v3586_v16  ;;  %1514 = vmatprep.subr.bf16.mxu1 %v3588_v17  ;;  %v3628_v44 = vld [vmem:[#allocation5 + $0x164] ss:$16 sps:$4 sm:$0xff]   ;;  %v3630_v45 = vld [vmem:[#allocation5 + $0x16c] ss:$16 sps:$4 sm:$0xff]   ;;  %v3632_v46 = vld [vmem:[#allocation5 + $0x160] ss:$16 sps:$4 sm:$0xff]  }
  0x5b   :  { %v3633_v47 = vld [vmem:[#allocation5 + $0x168] ss:$16 sps:$4 sm:$0xff]   ;;  %v3634_v49 = vld [vmem:[#allocation5 + $0x184] ss:$16 sps:$4 sm:$0xff]   ;;  %v3636_v50 = vld [vmem:[#allocation5 + $0x18c] ss:$16 sps:$4 sm:$0xff]  }
  0x5c   :  { %v3660_v48 = vld [vmem:[#allocation2 + $0x4] ss:$28 sps:$4 sm:$0xff]   ;;  %v3638_v51 = vld [vmem:[#allocation5 + $0x180] ss:$16 sps:$4 sm:$0xff]   ;;  %v3640_v53 = vld [vmem:[#allocation5 + $0x1a4] ss:$16 sps:$4 sm:$0xff]  }
  0x5d   :  { %1343 = vmatpush1.bf16.msra.mxu0 %v3590_v18  ;;  %1515 = vmatpush1.bf16.msra.mxu1 %v3591_v19  ;;  %v3639_v52 = vld [vmem:[#allocation5 + $0x188] ss:$16 sps:$4 sm:$0xff]   ;;  %v3642_v54 = vld [vmem:[#allocation5 + $0x1ac] ss:$16 sps:$4 sm:$0xff]   ;;  %v3644_v55 = vld [vmem:[#allocation5 + $0x1a0] ss:$16 sps:$4 sm:$0xff]  }
  0x5e   :  { %1344 = vmatprep.subr.bf16.mxu0 %v3592_v20  ;;  %1516 = vmatprep.subr.bf16.mxu1 %v3594_v21  ;;  %v3645_v56 = vld [vmem:[#allocation5 + $0x1a8] ss:$16 sps:$4 sm:$0xff]   ;;  %v3646_v57 = vld [vmem:[#allocation5 + $0x1c4] ss:$16 sps:$4 sm:$0xff]   ;;  %v3648_v58 = vld [vmem:[#allocation5 + $0x1cc] ss:$16 sps:$4 sm:$0xff]  }
  0x5f   :  { %1366 = vmatprep.mubr.bf16.mxu0 %v3660_v48  ;;  %1538 = vmatprep.mubr.bf16.mxu1 %v3660_v48  ;;  %v3650_v59 = vld [vmem:[#allocation5 + $0x1c0] ss:$16 sps:$4 sm:$0xff]   ;;  %v3651_v60 = vld [vmem:[#allocation5 + $0x1c8] ss:$16 sps:$4 sm:$0xff]   ;;  %v3652_v61 = vld [vmem:[#allocation5 + $0x1e4] ss:$16 sps:$4 sm:$0xff]  }
  0x60   :  { %v3654_v62 = vld [vmem:[#allocation5 + $0x1ec] ss:$16 sps:$4 sm:$0xff]   ;;  %v3656_v63 = vld [vmem:[#allocation5 + $0x1e0] ss:$16 sps:$4 sm:$0xff]   ;;  %v3657_v0 = vld [vmem:[#allocation5 + $0x1e8] ss:$16 sps:$4 sm:$0xff]  }
  0x61   :  { %1345 = vmatpush1.bf16.msra.mxu0 %v3596_v22  ;;  %1517 = vmatpush1.bf16.msra.mxu1 %v3597_v23  ;;  %v3663_v1 = vld [vmem:[#allocation5 + $0x204] ss:$16 sps:$4 sm:$0xff]   ;;  %v3666_v2 = vld [vmem:[#allocation5 + $0x20c] ss:$16 sps:$4 sm:$0xff]   ;;  %v3661_v4 = vld [vmem:[#allocation5 + $0x200] ss:$16 sps:$4 sm:$0xff]  }
  0x62   :  { %1346 = vmatprep.subr.bf16.mxu0 %v3598_v24  ;;  %1518 = vmatprep.subr.bf16.mxu1 %v3600_v25  ;;  %v3658_v3 = vld [vmem:[#allocation2] ss:$28 sps:$4 sm:$0xff]   ;;  %v3672_v7 = vld [vmem:[#allocation5 + $0x22c] ss:$16 sps:$4 sm:$0xff]   ;;  %v3667_v8 = vld [vmem:[#allocation5 + $0x220] ss:$16 sps:$4 sm:$0xff]  }
  0x63   :  { %v3664_v5 = vld [vmem:[#allocation5 + $0x208] ss:$16 sps:$4 sm:$0xff]   ;;  %v3669_v6 = vld [vmem:[#allocation5 + $0x224] ss:$16 sps:$4 sm:$0xff]   ;;  %v3678_v11 = vld [vmem:[#allocation5 + $0x24c] ss:$16 sps:$4 sm:$0xff]  }
  0x64   :  { %v3670_v9 = vld [vmem:[#allocation5 + $0x228] ss:$16 sps:$4 sm:$0xff]   ;;  %v3675_v10 = vld [vmem:[#allocation5 + $0x244] ss:$16 sps:$4 sm:$0xff]   ;;  %v3673_v12 = vld [vmem:[#allocation5 + $0x240] ss:$16 sps:$4 sm:$0xff]  }
  0x65   :  { %1347 = vmatpush1.bf16.msra.mxu0 %v3602_v26  ;;  %1519 = vmatpush1.bf16.msra.mxu1 %v3603_v27  ;;  %v3676_v13 = vld [vmem:[#allocation5 + $0x248] ss:$16 sps:$4 sm:$0xff]   ;;  %v3681_v14 = vld [vmem:[#allocation5 + $0x264] ss:$16 sps:$4 sm:$0xff]   ;;  %v3684_v15 = vld [vmem:[#allocation5 + $0x26c] ss:$16 sps:$4 sm:$0xff]  }
  0x66   :  { %1348 = vmatprep.subr.bf16.mxu0 %v3604_v28  ;;  %1520 = vmatprep.subr.bf16.mxu1 %v3606_v29  ;;  %v3679_v16 = vld [vmem:[#allocation5 + $0x260] ss:$16 sps:$4 sm:$0xff]   ;;  %v3682_v17 = vld [vmem:[#allocation5 + $0x268] ss:$16 sps:$4 sm:$0xff]   ;;  %v3687_v18 = vld [vmem:[#allocation5 + $0x284] ss:$16 sps:$4 sm:$0xff]  }
  0x67   :  { %v3690_v19 = vld [vmem:[#allocation5 + $0x28c] ss:$16 sps:$4 sm:$0xff]   ;;  %v3685_v20 = vld [vmem:[#allocation5 + $0x280] ss:$16 sps:$4 sm:$0xff]   ;;  %v3688_v21 = vld [vmem:[#allocation5 + $0x288] ss:$16 sps:$4 sm:$0xff]  }
  0x68   :  { %v3693_v22 = vld [vmem:[#allocation5 + $0x2a4] ss:$16 sps:$4 sm:$0xff]   ;;  %v3696_v23 = vld [vmem:[#allocation5 + $0x2ac] ss:$16 sps:$4 sm:$0xff]   ;;  %v3691_v24 = vld [vmem:[#allocation5 + $0x2a0] ss:$16 sps:$4 sm:$0xff]  }
  0x69   :  { %1349 = vmatpush1.bf16.msra.mxu0 %v3608_v30  ;;  %1521 = vmatpush1.bf16.msra.mxu1 %v3609_v31  ;;  %v3694_v25 = vld [vmem:[#allocation5 + $0x2a8] ss:$16 sps:$4 sm:$0xff]   ;;  %v3699_v26 = vld [vmem:[#allocation5 + $0x2c4] ss:$16 sps:$4 sm:$0xff]   ;;  %v3702_v27 = vld [vmem:[#allocation5 + $0x2cc] ss:$16 sps:$4 sm:$0xff]  }
  0x6a   :  { %1350 = vmatprep.subr.bf16.mxu0 %v3610_v32  ;;  %1522 = vmatprep.subr.bf16.mxu1 %v3612_v33  ;;  %v3697_v28 = vld [vmem:[#allocation5 + $0x2c0] ss:$16 sps:$4 sm:$0xff]   ;;  %v3700_v29 = vld [vmem:[#allocation5 + $0x2c8] ss:$16 sps:$4 sm:$0xff]   ;;  %v3705_v31 = vld [vmem:[#allocation5 + $0x2e4] ss:$16 sps:$4 sm:$0xff]  }
  0x6b   :  { %v3759_v30 = vld [vmem:[#allocation2 + $0xc] ss:$28 sps:$4 sm:$0xff]   ;;  %v3708_v32 = vld [vmem:[#allocation5 + $0x2ec] ss:$16 sps:$4 sm:$0xff]   ;;  %vm1330_vm0 = vcmask 130048   ;;  %s4219_s25 = smov [#allocation10]  }
  0x6c   :  { %v3703_v33 = vld [vmem:[#allocation5 + $0x2e0] ss:$16 sps:$4 sm:$0xff]   ;;  %v3732_v48 = vld [vmem:[#allocation5 + $0x36c] ss:$16 sps:$4 sm:$0xff]   ;;  %s3076_s26 = sshll.u32 %s4219_s25, 4  ;;  %s3077_s26 = int_to_ptr.vmem [resolvable:$true] %s3076_s26 }
  0x6d   :  { %1351 = vmatpush1.bf16.msra.mxu0 %v3614_v34  ;;  %1523 = vmatpush1.bf16.msra.mxu1 %v3615_v35  ;;  %v3706_v34 = vld [vmem:[#allocation5 + $0x2e8] ss:$16 sps:$4 sm:$0xff]   ;;  %v3711_v35 = vld [vmem:[#allocation5 + $0x304] ss:$16 sps:$4 sm:$0xff]   ;;  %p4183_p5 = scmp.lt.s32.totalorder %s3077_s26, %s3077_s26 }
  0x6e   :  { %1352 = vmatprep.subr.bf16.mxu0 %v3616_v36  ;;  %1524 = vmatprep.subr.bf16.mxu1 %v3618_v37  ;;  %v3714_v36 = vld [vmem:[#allocation5 + $0x30c] ss:$16 sps:$4 sm:$0xff]   ;;  %v3709_v37 = vld [vmem:[#allocation5 + $0x300] ss:$16 sps:$4 sm:$0xff]  }
  0x71   :  { %1353 = vmatpush1.bf16.msra.mxu0 %v3620_v38  ;;  %1525 = vmatpush1.bf16.msra.mxu1 %v3621_v39  ;;  %v3712_v38 = vld [vmem:[#allocation5 + $0x308] ss:$16 sps:$4 sm:$0xff]   ;;  %v3717_v39 = vld [vmem:[#allocation5 + $0x324] ss:$16 sps:$4 sm:$0xff]  }
  0x72   :  { %1354 = vmatprep.subr.bf16.mxu0 %v3622_v40  ;;  %1526 = vmatprep.subr.bf16.mxu1 %v3624_v41  ;;  %v3720_v40 = vld [vmem:[#allocation5 + $0x32c] ss:$16 sps:$4 sm:$0xff]   ;;  %v3715_v41 = vld [vmem:[#allocation5 + $0x320] ss:$16 sps:$4 sm:$0xff]  }
  0x75   :  { %1355 = vmatpush1.bf16.msra.mxu0 %v3626_v42  ;;  %1527 = vmatpush1.bf16.msra.mxu1 %v3627_v43  ;;  %v3718_v42 = vld [vmem:[#allocation5 + $0x328] ss:$16 sps:$4 sm:$0xff]   ;;  %v3723_v43 = vld [vmem:[#allocation5 + $0x344] ss:$16 sps:$4 sm:$0xff]  }
  0x76   :  { %1356 = vmatprep.subr.bf16.mxu0 %v3628_v44  ;;  %1528 = vmatprep.subr.bf16.mxu1 %v3630_v45  ;;  %v3726_v44 = vld [vmem:[#allocation5 + $0x34c] ss:$16 sps:$4 sm:$0xff]   ;;  %v3721_v45 = vld [vmem:[#allocation5 + $0x340] ss:$16 sps:$4 sm:$0xff]  }
  0x79   :  { %1357 = vmatpush1.bf16.msra.mxu0 %v3632_v46  ;;  %1529 = vmatpush1.bf16.msra.mxu1 %v3633_v47  ;;  %v3724_v46 = vld [vmem:[#allocation5 + $0x348] ss:$16 sps:$4 sm:$0xff]   ;;  %v3729_v47 = vld [vmem:[#allocation5 + $0x364] ss:$16 sps:$4 sm:$0xff]  }
  0x7a   :  { %1358 = vmatprep.subr.bf16.mxu0 %v3634_v49  ;;  %1530 = vmatprep.subr.bf16.mxu1 %v3636_v50  ;;  %v3727_v49 = vld [vmem:[#allocation5 + $0x360] ss:$16 sps:$4 sm:$0xff]   ;;  %v3730_v50 = vld [vmem:[#allocation5 + $0x368] ss:$16 sps:$4 sm:$0xff]  }
  0x7d   :  { %1359 = vmatpush1.bf16.msra.mxu0 %v3638_v51  ;;  %1531 = vmatpush1.bf16.msra.mxu1 %v3639_v52  ;;  %v3735_v51 = vld [vmem:[#allocation5 + $0x384] ss:$16 sps:$4 sm:$0xff]   ;;  %v3738_v52 = vld [vmem:[#allocation5 + $0x38c] ss:$16 sps:$4 sm:$0xff]  }
  0x7e   :  { %1360 = vmatprep.subr.bf16.mxu0 %v3640_v53  ;;  %1532 = vmatprep.subr.bf16.mxu1 %v3642_v54  ;;  %v3733_v53 = vld [vmem:[#allocation5 + $0x380] ss:$16 sps:$4 sm:$0xff]   ;;  %v3736_v54 = vld [vmem:[#allocation5 + $0x388] ss:$16 sps:$4 sm:$0xff]  }
  0x81   :  { %1361 = vmatpush1.bf16.msra.mxu0 %v3644_v55  ;;  %1533 = vmatpush1.bf16.msra.mxu1 %v3645_v56  ;;  %v3741_v55 = vld [vmem:[#allocation5 + $0x3a4] ss:$16 sps:$4 sm:$0xff]   ;;  %v3744_v56 = vld [vmem:[#allocation5 + $0x3ac] ss:$16 sps:$4 sm:$0xff]  }
  0x82   :  { %1362 = vmatprep.subr.bf16.mxu0 %v3646_v57  ;;  %1534 = vmatprep.subr.bf16.mxu1 %v3648_v58  ;;  %v3739_v57 = vld [vmem:[#allocation5 + $0x3a0] ss:$16 sps:$4 sm:$0xff]   ;;  %v3742_v58 = vld [vmem:[#allocation5 + $0x3a8] ss:$16 sps:$4 sm:$0xff]  }
  0x85   :  { %1363 = vmatpush1.bf16.msra.mxu0 %v3650_v59  ;;  %1535 = vmatpush1.bf16.msra.mxu1 %v3651_v60  ;;  %v3747_v59 = vld [vmem:[#allocation5 + $0x3c4] ss:$16 sps:$4 sm:$0xff]   ;;  %v3750_v60 = vld [vmem:[#allocation5 + $0x3cc] ss:$16 sps:$4 sm:$0xff]  }
  0x86   :  { %1364 = vmatprep.subr.bf16.mxu0 %v3652_v61  ;;  %1536 = vmatprep.subr.bf16.mxu1 %v3654_v62  ;;  %v3745_v61 = vld [vmem:[#allocation5 + $0x3c0] ss:$16 sps:$4 sm:$0xff]   ;;  %v3748_v62 = vld [vmem:[#allocation5 + $0x3c8] ss:$16 sps:$4 sm:$0xff]  }
  0x89   :  { %1365 = vmatpush1.bf16.msra.mxu0 %v3656_v63  ;;  %1537 = vmatpush1.bf16.msra.mxu1 %v3657_v0  ;;  %v3753_v63 = vld [vmem:[#allocation5 + $0x3e4] ss:$16 sps:$4 sm:$0xff]   ;;  %v3756_v0 = vld [vmem:[#allocation5 + $0x3ec] ss:$16 sps:$4 sm:$0xff]  }
  0x8a   :  { %1377 = vmatprep.subr.bf16.mxu0 %v3663_v1  ;;  %1549 = vmatprep.subr.bf16.mxu1 %v3666_v2  ;;  %v3751_v1 = vld [vmem:[#allocation5 + $0x3e0] ss:$16 sps:$4 sm:$0xff]   ;;  %v3754_v2 = vld [vmem:[#allocation5 + $0x3e8] ss:$16 sps:$4 sm:$0xff]  }
  0x8c   :  { %1367 = vmatmul.mubr.bf16.vlgmr.msra.gmra.mrb[0].mxu0 %v3658_v3  ;;  %1539 = vmatmul.mubr.bf16.vlgmr.msra.gmra.mrb[0].mxu1 %v3658_v3  ;;  %v3762_v3 = vld [vmem:[#allocation5 + $0x404] ss:$16 sps:$4 sm:$0xff]  }
  0x8d   :  { %1378 = vmatpush1.bf16.msra.mxu0 %v3661_v4  ;;  %1550 = vmatpush1.bf16.msra.mxu1 %v3664_v5  ;;  %v3765_v4 = vld [vmem:[#allocation5 + $0x40c] ss:$16 sps:$4 sm:$0xff]  }
  0x8e   :  { %1379 = vmatprep.subr.bf16.mxu0 %v3669_v6  ;;  %1551 = vmatprep.subr.bf16.mxu1 %v3672_v7  ;;  %v3757_v5 = vld [vmem:[#allocation2 + $0x8] ss:$28 sps:$4 sm:$0xff]   ;;  %v3763_v7 = vld [vmem:[#allocation5 + $0x408] ss:$16 sps:$4 sm:$0xff]  }
  0x8f   :  { %1409 = vmatprep.mubr.bf16.mxu0 %v3759_v30  ;;  %1581 = vmatprep.mubr.bf16.mxu1 %v3759_v30  ;;  %v3760_v6 = vld [vmem:[#allocation5 + $0x400] ss:$16 sps:$4 sm:$0xff]   ;;  %v3801_v30 = vld [vmem:[#allocation5 + $0x4cc] ss:$16 sps:$4 sm:$0xff]  }
  0x91   :  { %1380 = vmatpush1.bf16.msra.mxu0 %v3667_v8  ;;  %1552 = vmatpush1.bf16.msra.mxu1 %v3670_v9  ;;  %v3768_v8 = vld [vmem:[#allocation5 + $0x424] ss:$16 sps:$4 sm:$0xff]   ;;  %v3771_v9 = vld [vmem:[#allocation5 + $0x42c] ss:$16 sps:$4 sm:$0xff]  }
  0x92   :  { %1381 = vmatprep.subr.bf16.mxu0 %v3675_v10  ;;  %1553 = vmatprep.subr.bf16.mxu1 %v3678_v11  ;;  %v3766_v10 = vld [vmem:[#allocation5 + $0x420] ss:$16 sps:$4 sm:$0xff]   ;;  %v3769_v11 = vld [vmem:[#allocation5 + $0x428] ss:$16 sps:$4 sm:$0xff]  }
  0x95   :  { %1382 = vmatpush1.bf16.msra.mxu0 %v3673_v12  ;;  %1554 = vmatpush1.bf16.msra.mxu1 %v3676_v13  ;;  %v3858_v12 = vld [vmem:[#allocation2 + $0x14] ss:$28 sps:$4 sm:$0xff]   ;;  %v3774_v13 = vld [vmem:[#allocation5 + $0x444] ss:$16 sps:$4 sm:$0xff]  }
  0x96   :  { %1383 = vmatprep.subr.bf16.mxu0 %v3681_v14  ;;  %1555 = vmatprep.subr.bf16.mxu1 %v3684_v15  ;;  %v3777_v14 = vld [vmem:[#allocation5 + $0x44c] ss:$16 sps:$4 sm:$0xff]   ;;  %v3772_v15 = vld [vmem:[#allocation5 + $0x440] ss:$16 sps:$4 sm:$0xff]  }
  0x99   :  { %1384 = vmatpush1.bf16.msra.mxu0 %v3679_v16  ;;  %1556 = vmatpush1.bf16.msra.mxu1 %v3682_v17  ;;  %v3775_v16 = vld [vmem:[#allocation5 + $0x448] ss:$16 sps:$4 sm:$0xff]   ;;  %v3780_v17 = vld [vmem:[#allocation5 + $0x464] ss:$16 sps:$4 sm:$0xff]  }
  0x9a   :  { %1385 = vmatprep.subr.bf16.mxu0 %v3687_v18  ;;  %1557 = vmatprep.subr.bf16.mxu1 %v3690_v19  ;;  %v3783_v18 = vld [vmem:[#allocation5 + $0x46c] ss:$16 sps:$4 sm:$0xff]   ;;  %v3778_v19 = vld [vmem:[#allocation5 + $0x460] ss:$16 sps:$4 sm:$0xff]  }
  0x9d   :  { %1386 = vmatpush1.bf16.msra.mxu0 %v3685_v20  ;;  %1558 = vmatpush1.bf16.msra.mxu1 %v3688_v21  ;;  %v3781_v20 = vld [vmem:[#allocation5 + $0x468] ss:$16 sps:$4 sm:$0xff]   ;;  %v3786_v21 = vld [vmem:[#allocation5 + $0x484] ss:$16 sps:$4 sm:$0xff]  }
  0x9e   :  { %1387 = vmatprep.subr.bf16.mxu0 %v3693_v22  ;;  %1559 = vmatprep.subr.bf16.mxu1 %v3696_v23  ;;  %v3789_v22 = vld [vmem:[#allocation5 + $0x48c] ss:$16 sps:$4 sm:$0xff]   ;;  %v3784_v23 = vld [vmem:[#allocation5 + $0x480] ss:$16 sps:$4 sm:$0xff]  }
  0xa1   :  { %1388 = vmatpush1.bf16.msra.mxu0 %v3691_v24  ;;  %1560 = vmatpush1.bf16.msra.mxu1 %v3694_v25  ;;  %v3787_v24 = vld [vmem:[#allocation5 + $0x488] ss:$16 sps:$4 sm:$0xff]   ;;  %v3792_v25 = vld [vmem:[#allocation5 + $0x4a4] ss:$16 sps:$4 sm:$0xff]  }
  0xa2   :  { %1389 = vmatprep.subr.bf16.mxu0 %v3699_v26  ;;  %1561 = vmatprep.subr.bf16.mxu1 %v3702_v27  ;;  %v3795_v26 = vld [vmem:[#allocation5 + $0x4ac] ss:$16 sps:$4 sm:$0xff]   ;;  %v3790_v27 = vld [vmem:[#allocation5 + $0x4a0] ss:$16 sps:$4 sm:$0xff]  }
  0xa5   :  { %1390 = vmatpush1.bf16.msra.mxu0 %v3697_v28  ;;  %1562 = vmatpush1.bf16.msra.mxu1 %v3700_v29  ;;  %v3793_v28 = vld [vmem:[#allocation5 + $0x4a8] ss:$16 sps:$4 sm:$0xff]   ;;  %v3798_v29 = vld [vmem:[#allocation5 + $0x4c4] ss:$16 sps:$4 sm:$0xff]  }
  0xa6   :  { %1391 = vmatprep.subr.bf16.mxu0 %v3705_v31  ;;  %1563 = vmatprep.subr.bf16.mxu1 %v3708_v32  ;;  %v3796_v31 = vld [vmem:[#allocation5 + $0x4c0] ss:$16 sps:$4 sm:$0xff]   ;;  %v3799_v32 = vld [vmem:[#allocation5 + $0x4c8] ss:$16 sps:$4 sm:$0xff]  }
  0xa9   :  { %1392 = vmatpush1.bf16.msra.mxu0 %v3703_v33  ;;  %1564 = vmatpush1.bf16.msra.mxu1 %v3706_v34  ;;  %v3804_v33 = vld [vmem:[#allocation5 + $0x4e4] ss:$16 sps:$4 sm:$0xff]   ;;  %v3807_v34 = vld [vmem:[#allocation5 + $0x4ec] ss:$16 sps:$4 sm:$0xff]  }
  0xaa   :  { %1393 = vmatprep.subr.bf16.mxu0 %v3711_v35  ;;  %1565 = vmatprep.subr.bf16.mxu1 %v3714_v36  ;;  %v3802_v35 = vld [vmem:[#allocation5 + $0x4e0] ss:$16 sps:$4 sm:$0xff]   ;;  %v3805_v36 = vld [vmem:[#allocation5 + $0x4e8] ss:$16 sps:$4 sm:$0xff]  }
  0xad   :  { %1394 = vmatpush1.bf16.msra.mxu0 %v3709_v37  ;;  %1566 = vmatpush1.bf16.msra.mxu1 %v3712_v38  ;;  %v3810_v37 = vld [vmem:[#allocation5 + $0x504] ss:$16 sps:$4 sm:$0xff]   ;;  %v3813_v38 = vld [vmem:[#allocation5 + $0x50c] ss:$16 sps:$4 sm:$0xff]  }
  0xae   :  { %1395 = vmatprep.subr.bf16.mxu0 %v3717_v39  ;;  %1567 = vmatprep.subr.bf16.mxu1 %v3720_v40  ;;  %v3808_v39 = vld [vmem:[#allocation5 + $0x500] ss:$16 sps:$4 sm:$0xff]   ;;  %v3811_v40 = vld [vmem:[#allocation5 + $0x508] ss:$16 sps:$4 sm:$0xff]  }
  0xb1   :  { %1396 = vmatpush1.bf16.msra.mxu0 %v3715_v41  ;;  %1568 = vmatpush1.bf16.msra.mxu1 %v3718_v42  ;;  %v3816_v41 = vld [vmem:[#allocation5 + $0x524] ss:$16 sps:$4 sm:$0xff]   ;;  %v3819_v42 = vld [vmem:[#allocation5 + $0x52c] ss:$16 sps:$4 sm:$0xff]  }
  0xb2   :  { %1397 = vmatprep.subr.bf16.mxu0 %v3723_v43  ;;  %1569 = vmatprep.subr.bf16.mxu1 %v3726_v44  ;;  %v3814_v43 = vld [vmem:[#allocation5 + $0x520] ss:$16 sps:$4 sm:$0xff]   ;;  %v3817_v44 = vld [vmem:[#allocation5 + $0x528] ss:$16 sps:$4 sm:$0xff]  }
  0xb5   :  { %1398 = vmatpush1.bf16.msra.mxu0 %v3721_v45  ;;  %1570 = vmatpush1.bf16.msra.mxu1 %v3724_v46  ;;  %v3822_v45 = vld [vmem:[#allocation5 + $0x544] ss:$16 sps:$4 sm:$0xff]   ;;  %v3825_v46 = vld [vmem:[#allocation5 + $0x54c] ss:$16 sps:$4 sm:$0xff]  }
  0xb6   :  { %1399 = vmatprep.subr.bf16.mxu0 %v3729_v47  ;;  %1571 = vmatprep.subr.bf16.mxu1 %v3732_v48  ;;  %v3820_v47 = vld [vmem:[#allocation5 + $0x540] ss:$16 sps:$4 sm:$0xff]   ;;  %v3823_v48 = vld [vmem:[#allocation5 + $0x548] ss:$16 sps:$4 sm:$0xff]  }
  0xb9   :  { %1400 = vmatpush1.bf16.msra.mxu0 %v3727_v49  ;;  %1572 = vmatpush1.bf16.msra.mxu1 %v3730_v50  ;;  %v3828_v49 = vld [vmem:[#allocation5 + $0x564] ss:$16 sps:$4 sm:$0xff]   ;;  %v3831_v50 = vld [vmem:[#allocation5 + $0x56c] ss:$16 sps:$4 sm:$0xff]  }
  0xba   :  { %1401 = vmatprep.subr.bf16.mxu0 %v3735_v51  ;;  %1573 = vmatprep.subr.bf16.mxu1 %v3738_v52  ;;  %v3826_v51 = vld [vmem:[#allocation5 + $0x560] ss:$16 sps:$4 sm:$0xff]   ;;  %v3829_v52 = vld [vmem:[#allocation5 + $0x568] ss:$16 sps:$4 sm:$0xff]  }
  0xbd   :  { %1402 = vmatpush1.bf16.msra.mxu0 %v3733_v53  ;;  %1574 = vmatpush1.bf16.msra.mxu1 %v3736_v54  ;;  %v3834_v53 = vld [vmem:[#allocation5 + $0x584] ss:$16 sps:$4 sm:$0xff]   ;;  %v3837_v54 = vld [vmem:[#allocation5 + $0x58c] ss:$16 sps:$4 sm:$0xff]  }
  0xbe   :  { %1403 = vmatprep.subr.bf16.mxu0 %v3741_v55  ;;  %1575 = vmatprep.subr.bf16.mxu1 %v3744_v56  ;;  %v3832_v55 = vld [vmem:[#allocation5 + $0x580] ss:$16 sps:$4 sm:$0xff]   ;;  %v3835_v56 = vld [vmem:[#allocation5 + $0x588] ss:$16 sps:$4 sm:$0xff]  }
  0xc1   :  { %1404 = vmatpush1.bf16.msra.mxu0 %v3739_v57  ;;  %1576 = vmatpush1.bf16.msra.mxu1 %v3742_v58  ;;  %v3840_v57 = vld [vmem:[#allocation5 + $0x5a4] ss:$16 sps:$4 sm:$0xff]   ;;  %v3843_v58 = vld [vmem:[#allocation5 + $0x5ac] ss:$16 sps:$4 sm:$0xff]  }
  0xc2   :  { %1405 = vmatprep.subr.bf16.mxu0 %v3747_v59  ;;  %1577 = vmatprep.subr.bf16.mxu1 %v3750_v60  ;;  %v3838_v59 = vld [vmem:[#allocation5 + $0x5a0] ss:$16 sps:$4 sm:$0xff]   ;;  %v3841_v60 = vld [vmem:[#allocation5 + $0x5a8] ss:$16 sps:$4 sm:$0xff]  }
  0xc5   :  { %1406 = vmatpush1.bf16.msra.mxu0 %v3745_v61  ;;  %1578 = vmatpush1.bf16.msra.mxu1 %v3748_v62  ;;  %v3846_v61 = vld [vmem:[#allocation5 + $0x5c4] ss:$16 sps:$4 sm:$0xff]   ;;  %v3849_v62 = vld [vmem:[#allocation5 + $0x5cc] ss:$16 sps:$4 sm:$0xff]  }
  0xc6   :  { %1407 = vmatprep.subr.bf16.mxu0 %v3753_v63  ;;  %1579 = vmatprep.subr.bf16.mxu1 %v3756_v0  ;;  %v3844_v63 = vld [vmem:[#allocation5 + $0x5c0] ss:$16 sps:$4 sm:$0xff]   ;;  %v3847_v0 = vld [vmem:[#allocation5 + $0x5c8] ss:$16 sps:$4 sm:$0xff]  }
  0xc9   :  { %1408 = vmatpush1.bf16.msra.mxu0 %v3751_v1  ;;  %1580 = vmatpush1.bf16.msra.mxu1 %v3754_v2  ;;  %v3852_v1 = vld [vmem:[#allocation5 + $0x5e4] ss:$16 sps:$4 sm:$0xff]   ;;  %v3855_v2 = vld [vmem:[#allocation5 + $0x5ec] ss:$16 sps:$4 sm:$0xff]  }
  0xca   :  { %1420 = vmatprep.subr.bf16.mxu0 %v3762_v3  ;;  %1592 = vmatprep.subr.bf16.mxu1 %v3765_v4  ;;  %v3850_v3 = vld [vmem:[#allocation5 + $0x5e0] ss:$16 sps:$4 sm:$0xff]   ;;  %v3853_v4 = vld [vmem:[#allocation5 + $0x5e8] ss:$16 sps:$4 sm:$0xff]  }
  0xcc   :  { %1410 = vmatmul.mubr.bf16.vlgmr.msra.gmra.mrb[0].mxu0 %v3757_v5  ;;  %1582 = vmatmul.mubr.bf16.vlgmr.msra.gmra.mrb[0].mxu1 %v3757_v5  ;;  %v3861_v5 = vld [vmem:[#allocation5 + $0x604] ss:$16 sps:$4 sm:$0xff]  }
  0xcd   :  { %1421 = vmatpush1.bf16.msra.mxu0 %v3760_v6  ;;  %1593 = vmatpush1.bf16.msra.mxu1 %v3763_v7  ;;  %v3864_v6 = vld [vmem:[#allocation5 + $0x60c] ss:$16 sps:$4 sm:$0xff]   ;;  %v3856_v7 = vld [vmem:[#allocation2 + $0x10] ss:$28 sps:$4 sm:$0xff]  }
  0xce   :  { %1422 = vmatprep.subr.bf16.mxu0 %v3768_v8  ;;  %1594 = vmatprep.subr.bf16.mxu1 %v3771_v9  ;;  %v3859_v8 = vld [vmem:[#allocation5 + $0x600] ss:$16 sps:$4 sm:$0xff]   ;;  %v3862_v9 = vld [vmem:[#allocation5 + $0x608] ss:$16 sps:$4 sm:$0xff]  }
  0xcf   :  { %1452 = vmatprep.mubr.bf16.mxu0 %v3858_v12  ;;  %1624 = vmatprep.mubr.bf16.mxu1 %v3858_v12  ;;  %v4218_v12 = vmov 0  }
  0xd1   :  { %1423 = vmatpush1.bf16.msra.mxu0 %v3766_v10  ;;  %1595 = vmatpush1.bf16.msra.mxu1 %v3769_v11  ;;  %v3868_v10 = vld [vmem:[#allocation7 + $0x4] ss:$16 sps:$4 sm:$0xff]   ;;  %v3871_v11 = vld [vmem:[#allocation7 + $0xc] ss:$16 sps:$4 sm:$0xff]  }
  0xd2   :  { %1424 = vmatprep.subr.bf16.mxu0 %v3774_v13  ;;  %1596 = vmatprep.subr.bf16.mxu1 %v3777_v14  ;;  %v3865_v13 = vld [vmem:[#allocation2 + $0x18] ss:$28 sps:$4 sm:$0xff]  }
  0xd3   :  { %v3866_v14 = vld [vmem:[#allocation7] ss:$16 sps:$4 sm:$0xff]  }
  0xd5   :  { %1425 = vmatpush1.bf16.msra.mxu0 %v3772_v15  ;;  %1597 = vmatpush1.bf16.msra.mxu1 %v3775_v16  ;;  %v3869_v15 = vld [vmem:[#allocation7 + $0x8] ss:$16 sps:$4 sm:$0xff]   ;;  %v3874_v16 = vld [vmem:[#allocation7 + $0x24] ss:$16 sps:$4 sm:$0xff]  }
  0xd6   :  { %1426 = vmatprep.subr.bf16.mxu0 %v3780_v17  ;;  %1598 = vmatprep.subr.bf16.mxu1 %v3783_v18  ;;  %v3877_v17 = vld [vmem:[#allocation7 + $0x2c] ss:$16 sps:$4 sm:$0xff]   ;;  %v3872_v18 = vld [vmem:[#allocation7 + $0x20] ss:$16 sps:$4 sm:$0xff]  }
  0xd9   :  { %1427 = vmatpush1.bf16.msra.mxu0 %v3778_v19  ;;  %1599 = vmatpush1.bf16.msra.mxu1 %v3781_v20  ;;  %v3875_v19 = vld [vmem:[#allocation7 + $0x28] ss:$16 sps:$4 sm:$0xff]   ;;  %v3880_v20 = vld [vmem:[#allocation7 + $0x44] ss:$16 sps:$4 sm:$0xff]  }
  0xda   :  { %1428 = vmatprep.subr.bf16.mxu0 %v3786_v21  ;;  %1600 = vmatprep.subr.bf16.mxu1 %v3789_v22  ;;  %v3883_v21 = vld [vmem:[#allocation7 + $0x4c] ss:$16 sps:$4 sm:$0xff]   ;;  %v3878_v22 = vld [vmem:[#allocation7 + $0x40] ss:$16 sps:$4 sm:$0xff]  }
  0xdd   :  { %1429 = vmatpush1.bf16.msra.mxu0 %v3784_v23  ;;  %1601 = vmatpush1.bf16.msra.mxu1 %v3787_v24  ;;  %v3881_v23 = vld [vmem:[#allocation7 + $0x48] ss:$16 sps:$4 sm:$0xff]   ;;  %v3886_v24 = vld [vmem:[#allocation7 + $0x64] ss:$16 sps:$4 sm:$0xff]  }
  0xde   :  { %1430 = vmatprep.subr.bf16.mxu0 %v3792_v25  ;;  %1602 = vmatprep.subr.bf16.mxu1 %v3795_v26  ;;  %v3889_v25 = vld [vmem:[#allocation7 + $0x6c] ss:$16 sps:$4 sm:$0xff]   ;;  %v3884_v26 = vld [vmem:[#allocation7 + $0x60] ss:$16 sps:$4 sm:$0xff]  }
  0xe1   :  { %1431 = vmatpush1.bf16.msra.mxu0 %v3790_v27  ;;  %1603 = vmatpush1.bf16.msra.mxu1 %v3793_v28  ;;  %v3887_v27 = vld [vmem:[#allocation7 + $0x68] ss:$16 sps:$4 sm:$0xff]   ;;  %v3892_v28 = vld [vmem:[#allocation7 + $0x84] ss:$16 sps:$4 sm:$0xff]  }
  0xe2   :  { %1432 = vmatprep.subr.bf16.mxu0 %v3798_v29  ;;  %1604 = vmatprep.subr.bf16.mxu1 %v3801_v30  ;;  %v3895_v29 = vld [vmem:[#allocation7 + $0x8c] ss:$16 sps:$4 sm:$0xff]   ;;  %v3890_v30 = vld [vmem:[#allocation7 + $0x80] ss:$16 sps:$4 sm:$0xff]  }
  0xe5   :  { %1433 = vmatpush1.bf16.msra.mxu0 %v3796_v31  ;;  %1605 = vmatpush1.bf16.msra.mxu1 %v3799_v32  ;;  %v3893_v31 = vld [vmem:[#allocation7 + $0x88] ss:$16 sps:$4 sm:$0xff]   ;;  %v3898_v32 = vld [vmem:[#allocation7 + $0xa4] ss:$16 sps:$4 sm:$0xff]  }
  0xe6   :  { %1434 = vmatprep.subr.bf16.mxu0 %v3804_v33  ;;  %1606 = vmatprep.subr.bf16.mxu1 %v3807_v34  ;;  %v3901_v33 = vld [vmem:[#allocation7 + $0xac] ss:$16 sps:$4 sm:$0xff]   ;;  %v3896_v34 = vld [vmem:[#allocation7 + $0xa0] ss:$16 sps:$4 sm:$0xff]  }
  0xe9   :  { %1435 = vmatpush1.bf16.msra.mxu0 %v3802_v35  ;;  %1607 = vmatpush1.bf16.msra.mxu1 %v3805_v36  ;;  %v3899_v35 = vld [vmem:[#allocation7 + $0xa8] ss:$16 sps:$4 sm:$0xff]   ;;  %v3904_v36 = vld [vmem:[#allocation7 + $0xc4] ss:$16 sps:$4 sm:$0xff]  }
  0xea   :  { %1436 = vmatprep.subr.bf16.mxu0 %v3810_v37  ;;  %1608 = vmatprep.subr.bf16.mxu1 %v3813_v38  ;;  %v3907_v37 = vld [vmem:[#allocation7 + $0xcc] ss:$16 sps:$4 sm:$0xff]   ;;  %v3902_v38 = vld [vmem:[#allocation7 + $0xc0] ss:$16 sps:$4 sm:$0xff]  }
  0xed   :  { %1437 = vmatpush1.bf16.msra.mxu0 %v3808_v39  ;;  %1609 = vmatpush1.bf16.msra.mxu1 %v3811_v40  ;;  %v3905_v39 = vld [vmem:[#allocation7 + $0xc8] ss:$16 sps:$4 sm:$0xff]   ;;  %v3910_v40 = vld [vmem:[#allocation7 + $0xe4] ss:$16 sps:$4 sm:$0xff]  }
  0xee   :  { %1438 = vmatprep.subr.bf16.mxu0 %v3816_v41  ;;  %1610 = vmatprep.subr.bf16.mxu1 %v3819_v42  ;;  %v3913_v41 = vld [vmem:[#allocation7 + $0xec] ss:$16 sps:$4 sm:$0xff]   ;;  %v3908_v42 = vld [vmem:[#allocation7 + $0xe0] ss:$16 sps:$4 sm:$0xff]  }
  0xf1   :  { %1439 = vmatpush1.bf16.msra.mxu0 %v3814_v43  ;;  %1611 = vmatpush1.bf16.msra.mxu1 %v3817_v44  ;;  %v3911_v43 = vld [vmem:[#allocation7 + $0xe8] ss:$16 sps:$4 sm:$0xff]   ;;  %v3916_v44 = vld [vmem:[#allocation7 + $0x104] ss:$16 sps:$4 sm:$0xff]  }
  0xf2   :  { %1440 = vmatprep.subr.bf16.mxu0 %v3822_v45  ;;  %1612 = vmatprep.subr.bf16.mxu1 %v3825_v46  ;;  %v3919_v45 = vld [vmem:[#allocation7 + $0x10c] ss:$16 sps:$4 sm:$0xff]   ;;  %v3914_v46 = vld [vmem:[#allocation7 + $0x100] ss:$16 sps:$4 sm:$0xff]  }
  0xf5   :  { %1441 = vmatpush1.bf16.msra.mxu0 %v3820_v47  ;;  %1613 = vmatpush1.bf16.msra.mxu1 %v3823_v48  ;;  %v3917_v47 = vld [vmem:[#allocation7 + $0x108] ss:$16 sps:$4 sm:$0xff]   ;;  %v3922_v48 = vld [vmem:[#allocation7 + $0x124] ss:$16 sps:$4 sm:$0xff]  }
  0xf6   :  { %1442 = vmatprep.subr.bf16.mxu0 %v3828_v49  ;;  %1614 = vmatprep.subr.bf16.mxu1 %v3831_v50  ;;  %v3925_v49 = vld [vmem:[#allocation7 + $0x12c] ss:$16 sps:$4 sm:$0xff]   ;;  %v3920_v50 = vld [vmem:[#allocation7 + $0x120] ss:$16 sps:$4 sm:$0xff]  }
  0xf9   :  { %1443 = vmatpush1.bf16.msra.mxu0 %v3826_v51  ;;  %1615 = vmatpush1.bf16.msra.mxu1 %v3829_v52  ;;  %v3923_v51 = vld [vmem:[#allocation7 + $0x128] ss:$16 sps:$4 sm:$0xff]   ;;  %v3928_v52 = vld [vmem:[#allocation7 + $0x144] ss:$16 sps:$4 sm:$0xff]  }
  0xfa   :  { %1444 = vmatprep.subr.bf16.mxu0 %v3834_v53  ;;  %1616 = vmatprep.subr.bf16.mxu1 %v3837_v54  ;;  %v3931_v53 = vld [vmem:[#allocation7 + $0x14c] ss:$16 sps:$4 sm:$0xff]   ;;  %v3926_v54 = vld [vmem:[#allocation7 + $0x140] ss:$16 sps:$4 sm:$0xff]  }
  0xfd   :  { %1445 = vmatpush1.bf16.msra.mxu0 %v3832_v55  ;;  %1617 = vmatpush1.bf16.msra.mxu1 %v3835_v56  ;;  %v3929_v55 = vld [vmem:[#allocation7 + $0x148] ss:$16 sps:$4 sm:$0xff]   ;;  %v3934_v56 = vld [vmem:[#allocation7 + $0x164] ss:$16 sps:$4 sm:$0xff]  }
  0xfe   :  { %1446 = vmatprep.subr.bf16.mxu0 %v3840_v57  ;;  %1618 = vmatprep.subr.bf16.mxu1 %v3843_v58  ;;  %v3937_v57 = vld [vmem:[#allocation7 + $0x16c] ss:$16 sps:$4 sm:$0xff]   ;;  %v3932_v58 = vld [vmem:[#allocation7 + $0x160] ss:$16 sps:$4 sm:$0xff]  }
 0x101   :  { %1447 = vmatpush1.bf16.msra.mxu0 %v3838_v59  ;;  %1619 = vmatpush1.bf16.msra.mxu1 %v3841_v60  ;;  %v3935_v59 = vld [vmem:[#allocation7 + $0x168] ss:$16 sps:$4 sm:$0xff]   ;;  %v3940_v60 = vld [vmem:[#allocation7 + $0x184] ss:$16 sps:$4 sm:$0xff]  }
 0x102   :  { %1448 = vmatprep.subr.bf16.mxu0 %v3846_v61  ;;  %1620 = vmatprep.subr.bf16.mxu1 %v3849_v62  ;;  %v3943_v61 = vld [vmem:[#allocation7 + $0x18c] ss:$16 sps:$4 sm:$0xff]   ;;  %v3938_v62 = vld [vmem:[#allocation7 + $0x180] ss:$16 sps:$4 sm:$0xff]  }
 0x105   :  { %1449 = vmatpush1.bf16.msra.mxu0 %v3844_v63  ;;  %1621 = vmatpush1.bf16.msra.mxu1 %v3847_v0  ;;  %v3941_v63 = vld [vmem:[#allocation7 + $0x188] ss:$16 sps:$4 sm:$0xff]   ;;  %v3946_v0 = vld [vmem:[#allocation7 + $0x1a4] ss:$16 sps:$4 sm:$0xff]  }
 0x106   :  { %1450 = vmatprep.subr.bf16.mxu0 %v3852_v1  ;;  %1622 = vmatprep.subr.bf16.mxu1 %v3855_v2  ;;  %v3949_v1 = vld [vmem:[#allocation7 + $0x1ac] ss:$16 sps:$4 sm:$0xff]   ;;  %v3944_v2 = vld [vmem:[#allocation7 + $0x1a0] ss:$16 sps:$4 sm:$0xff]  }
 0x109   :  { %1451 = vmatpush1.bf16.msra.mxu0 %v3850_v3  ;;  %1623 = vmatpush1.bf16.msra.mxu1 %v3853_v4  ;;  %v3947_v3 = vld [vmem:[#allocation7 + $0x1a8] ss:$16 sps:$4 sm:$0xff]   ;;  %v3952_v4 = vld [vmem:[#allocation7 + $0x1c4] ss:$16 sps:$4 sm:$0xff]  }
 0x10a   :  { %1463 = vmatprep.subr.bf16.mxu0 %v3861_v5  ;;  %1635 = vmatprep.subr.bf16.mxu1 %v3864_v6  ;;  %v3955_v5 = vld [vmem:[#allocation7 + $0x1cc] ss:$16 sps:$4 sm:$0xff]   ;;  %v3950_v6 = vld [vmem:[#allocation7 + $0x1c0] ss:$16 sps:$4 sm:$0xff]  }
 0x10c   :  { %1453 = vmatmul.mubr.bf16.vlgmr.msra.gmra.mrb[0].mxu0 %v3856_v7  ;;  %1625 = vmatmul.mubr.bf16.vlgmr.msra.gmra.mrb[0].mxu1 %v3856_v7  ;;  %v3953_v7 = vld [vmem:[#allocation7 + $0x1c8] ss:$16 sps:$4 sm:$0xff]  }
 0x10d   :  { %1464 = vmatpush1.bf16.msra.mxu0 %v3859_v8  ;;  %1636 = vmatpush1.bf16.msra.mxu1 %v3862_v9  ;;  %v3958_v8 = vld [vmem:[#allocation7 + $0x1e4] ss:$16 sps:$4 sm:$0xff]   ;;  %v3961_v9 = vld [vmem:[#allocation7 + $0x1ec] ss:$16 sps:$4 sm:$0xff]  }
 0x10e   :  { %1495 = vmatprep.mubr.bf16.mxu0 %v4218_v12  ;;  %1667 = vmatprep.mubr.bf16.mxu1 %v4218_v12  ;;  %v3964_v12 = vld [vmem:[#allocation7 + $0x204] ss:$16 sps:$4 sm:$0xff]  }
 0x10f   :  { %2510 = vmatprep.subr.bf16.mxu0 %v3868_v10  ;;  %2596 = vmatprep.subr.bf16.mxu1 %v3871_v11  ;;  %v3956_v10 = vld [vmem:[#allocation7 + $0x1e0] ss:$16 sps:$4 sm:$0xff]   ;;  %v3959_v11 = vld [vmem:[#allocation7 + $0x1e8] ss:$16 sps:$4 sm:$0xff]  }
 0x118   :  { %3293 = vmatmul.mubr.msk.bf16.vlgmr.msra.gmra.mrb[0].mxu0 %vm1330_vm0, %v3865_v13  ;;  %3294 = vmatmul.mubr.msk.bf16.vlgmr.msra.gmra.mrb[0].mxu1 %vm1330_vm0, %v3865_v13  ;;  %v3967_v13 = vld [vmem:[#allocation7 + $0x20c] ss:$16 sps:$4 sm:$0xff]  }
 0x119   :  { %2511 = vmatpush1.bf16.msra.mxu0 %v3866_v14  ;;  %2597 = vmatpush1.bf16.msra.mxu1 %v3869_v15  ;;  %v295_v14 = vlaneseq }
 0x11a   :  { %2512 = vmatprep.subr.bf16.mxu0 %v3874_v16  ;;  %2598 = vmatprep.subr.bf16.mxu1 %v3877_v17 }
 0x11b   :  { %v296_v15 = vshrl.u32 %v295_v14, 7  ;;  %v3980_v14 = vld [vmem:[#allocation7 + $0x260] ss:$16 sps:$4 sm:$0xff]  }
 0x11d   :  { %2513 = vmatpush1.bf16.msra.mxu0 %v3872_v18  ;;  %2599 = vmatpush1.bf16.msra.mxu1 %v3875_v19  ;;  %v4333_v16 = vsub.s32 0, %v296_v15  ;;  %v4335_v17 = vsub.s32 2, %v296_v15  ;;  %v89_v18 = vld [vmem:[%s4390_s2] sm:$0xf]  ;;  %v4340_v19 = vsub.s32 1, %v296_v15 }
 0x11e   :  { %2514 = vmatprep.subr.bf16.mxu0 %v3880_v20  ;;  %2600 = vmatprep.subr.bf16.mxu1 %v3883_v21  ;;  %v4342_v20 = vsub.s32 3, %v296_v15  ;;  %v3983_v15 = vld [vmem:[#allocation7 + $0x268] ss:$16 sps:$4 sm:$0xff]  }
 0x11f   :  { %v298_v21 = vrot.slane %v89_v18, %v4333_v16 }
 0x121   :  { %2515 = vmatpush1.bf16.msra.mxu0 %v3878_v22  ;;  %2601 = vmatpush1.bf16.msra.mxu1 %v3881_v23  ;;  %v306_v22 = vrot.slane %v89_v18, %v4335_v17  ;;  %v1686_v23 = vld [vmem:[%s4391_s3] sm:$0xf] }
 0x122   :  { %2516 = vmatprep.subr.bf16.mxu0 %v3886_v24  ;;  %2602 = vmatprep.subr.bf16.mxu1 %v3889_v25  ;;  %v302_v24 = vrot.slane %v89_v18, %v4340_v19  ;;  %v310_v25 = vrot.slane %v89_v18, %v4342_v20  ;;  %v3988_v18 = vld [vmem:[#allocation7 + $0x284] ss:$16 sps:$4 sm:$0xff]  }
 0x125   :  { %2517 = vmatpush1.bf16.msra.mxu0 %v3884_v26  ;;  %2603 = vmatpush1.bf16.msra.mxu1 %v3887_v27 }
 0x126   :  { %2518 = vmatprep.subr.bf16.mxu0 %v3892_v28  ;;  %2604 = vmatprep.subr.bf16.mxu1 %v3895_v29  ;;  %v1691_v29 = vrot.slane %v1686_v23, %v4333_v16 }
 0x129   :  { %2519 = vmatpush1.bf16.msra.mxu0 %v3890_v30  ;;  %2605 = vmatpush1.bf16.msra.mxu1 %v3893_v31  ;;  %v1699_v31 = vrot.slane %v1686_v23, %v4335_v17 }
 0x12a   :  { %2520 = vmatprep.subr.bf16.mxu0 %v3898_v32  ;;  %2606 = vmatprep.subr.bf16.mxu1 %v3901_v33 }
 0x12d   :  { %2521 = vmatpush1.bf16.msra.mxu0 %v3896_v34  ;;  %2607 = vmatpush1.bf16.msra.mxu1 %v3899_v35  ;;  %v1695_v35 = vrot.slane %v1686_v23, %v4340_v19 }
 0x12e   :  { %2522 = vmatprep.subr.bf16.mxu0 %v3904_v36  ;;  %2608 = vmatprep.subr.bf16.mxu1 %v3907_v37  ;;  %v1703_v37 = vrot.slane %v1686_v23, %v4342_v20  ;;  %v3989_v23 = vld [vmem:[#allocation7 + $0x288] ss:$16 sps:$4 sm:$0xff]  }
 0x131   :  { %2523 = vmatpush1.bf16.msra.mxu0 %v3902_v38  ;;  %2609 = vmatpush1.bf16.msra.mxu1 %v3905_v39 }
 0x132   :  { %2524 = vmatprep.subr.bf16.mxu0 %v3910_v40  ;;  %2610 = vmatprep.subr.bf16.mxu1 %v3913_v41 }
 0x135   :  { %2525 = vmatpush1.bf16.msra.mxu0 %v3908_v42  ;;  %2611 = vmatpush1.bf16.msra.mxu1 %v3911_v43 }
 0x136   :  { %2526 = vmatprep.subr.bf16.mxu0 %v3916_v44  ;;  %2612 = vmatprep.subr.bf16.mxu1 %v3919_v45 }
 0x139   :  { %2527 = vmatpush1.bf16.msra.mxu0 %v3914_v46  ;;  %2613 = vmatpush1.bf16.msra.mxu1 %v3917_v47 }
 0x13a   :  { %2528 = vmatprep.subr.bf16.mxu0 %v3922_v48  ;;  %2614 = vmatprep.subr.bf16.mxu1 %v3925_v49 }
 0x13d   :  { %2529 = vmatpush1.bf16.msra.mxu0 %v3920_v50  ;;  %2615 = vmatpush1.bf16.msra.mxu1 %v3923_v51 }
 0x13e   :  { %2530 = vmatprep.subr.bf16.mxu0 %v3928_v52  ;;  %2616 = vmatprep.subr.bf16.mxu1 %v3931_v53 }
 0x141   :  { %2531 = vmatpush1.bf16.msra.mxu0 %v3926_v54  ;;  %2617 = vmatpush1.bf16.msra.mxu1 %v3929_v55 }
 0x142   :  { %2532 = vmatprep.subr.bf16.mxu0 %v3934_v56  ;;  %2618 = vmatprep.subr.bf16.mxu1 %v3937_v57 }
 0x145   :  { %2533 = vmatpush1.bf16.msra.mxu0 %v3932_v58  ;;  %2619 = vmatpush1.bf16.msra.mxu1 %v3935_v59 }
 0x146   :  { %2534 = vmatprep.subr.bf16.mxu0 %v3940_v60  ;;  %2620 = vmatprep.subr.bf16.mxu1 %v3943_v61 }
 0x149   :  { %2535 = vmatpush1.bf16.msra.mxu0 %v3938_v62  ;;  %2621 = vmatpush1.bf16.msra.mxu1 %v3941_v63 }
 0x14a   :  { %2536 = vmatprep.subr.bf16.mxu0 %v3946_v0  ;;  %2622 = vmatprep.subr.bf16.mxu1 %v3949_v1  ;;  %v3962_v1 = vld [vmem:[#allocation7 + $0x200] ss:$16 sps:$4 sm:$0xff]  }
 0x14d   :  { %2537 = vmatpush1.bf16.msra.mxu0 %v3944_v2  ;;  %2623 = vmatpush1.bf16.msra.mxu1 %v3947_v3  ;;  %v3965_v2 = vld [vmem:[#allocation7 + $0x208] ss:$16 sps:$4 sm:$0xff]  }
 0x14e   :  { %2538 = vmatprep.subr.bf16.mxu0 %v3952_v4  ;;  %2624 = vmatprep.subr.bf16.mxu1 %v3955_v5  ;;  %v3970_v4 = vld [vmem:[#allocation7 + $0x224] ss:$16 sps:$4 sm:$0xff]   ;;  %v3973_v5 = vld [vmem:[#allocation7 + $0x22c] ss:$16 sps:$4 sm:$0xff]  }
 0x151   :  { %2539 = vmatpush1.bf16.msra.mxu0 %v3950_v6  ;;  %2625 = vmatpush1.bf16.msra.mxu1 %v3953_v7  ;;  %v3968_v6 = vld [vmem:[#allocation7 + $0x220] ss:$16 sps:$4 sm:$0xff]   ;;  %v3971_v7 = vld [vmem:[#allocation7 + $0x228] ss:$16 sps:$4 sm:$0xff]  }
 0x152   :  { %2540 = vmatprep.subr.bf16.mxu0 %v3958_v8  ;;  %2626 = vmatprep.subr.bf16.mxu1 %v3961_v9  ;;  %v3976_v8 = vld [vmem:[#allocation7 + $0x244] ss:$16 sps:$4 sm:$0xff]   ;;  %v3979_v9 = vld [vmem:[#allocation7 + $0x24c] ss:$16 sps:$4 sm:$0xff]  }
 0x155   :  { %2541 = vmatpush1.bf16.msra.mxu0 %v3956_v10  ;;  %2627 = vmatpush1.bf16.msra.mxu1 %v3959_v11  ;;  %v3974_v10 = vld [vmem:[#allocation7 + $0x240] ss:$16 sps:$4 sm:$0xff]   ;;  %v3977_v11 = vld [vmem:[#allocation7 + $0x248] ss:$16 sps:$4 sm:$0xff]  }
 0x156   :  { %2553 = vmatprep.subr.bf16.mxu0 %v3964_v12  ;;  %2639 = vmatprep.subr.bf16.mxu1 %v3967_v13  ;;  %v3982_v12 = vld [vmem:[#allocation7 + $0x264] ss:$16 sps:$4 sm:$0xff]   ;;  %v3985_v13 = vld [vmem:[#allocation7 + $0x26c] ss:$16 sps:$4 sm:$0xff]  }
 0x1eb   :  { %v1497_v26 = vpop.f32.mrb[0].mxu0  ;;  %v1669_v27 = vpop.f32.mrb[0].mxu1 }
 0x1ec   :  { %v3500_v28 = vadd.f32 %v1497_v26, %v298_v21  ;;  %v3504_v30 = vadd.f32 %v1669_v27, %v306_v22  ;;  %v1499_v32 = vpop.f32.mrb[1].mxu0  ;;  %v1671_v33 = vpop.f32.mrb[1].mxu1  ;;  %v3992_v26 = vld [vmem:[#allocation7 + $0x2a0] ss:$16 sps:$4 sm:$0xff]   ;;  %v3995_v27 = vld [vmem:[#allocation7 + $0x2a8] ss:$16 sps:$4 sm:$0xff]  }
 0x1ed   :  { %v3501_v34 = vadd.f32 %v1499_v32, %v302_v24  ;;  %v3505_v36 = vadd.f32 %v1671_v33, %v310_v25  ;;  %v1501_v38 = vpop.f32.mrb[2].mxu0  ;;  %v1673_v39 = vpop.f32.mrb[2].mxu1  ;;  %v4006_v32 = vld [vmem:[#allocation7 + $0x2e4] ss:$16 sps:$4 sm:$0xff]   ;;  %v4009_v33 = vld [vmem:[#allocation7 + $0x2ec] ss:$16 sps:$4 sm:$0xff]  }
 0x1ee   :  { %v1678_v40 = vmax.f32 %v3500_v28, 0.0  ;;  %v1680_v41 = vmax.f32 %v3504_v30, 0.0  ;;  %v3502_v42 = vadd.f32 %v1501_v38, %v298_v21  ;;  %v3506_v43 = vadd.f32 %v1673_v39, %v306_v22  ;;  %v1503_v44 = vpop.f32.mrb[3].mxu0  ;;  %v1675_v45 = vpop.f32.mrb[3].mxu1  ;;  %v3991_v21 = vld [vmem:[#allocation7 + $0x28c] ss:$16 sps:$4 sm:$0xff]  }
 0x1ef   :  { %v1679_v46 = vmax.f32 %v3501_v34, 0.0  ;;  %v1681_v47 = vmax.f32 %v3505_v36, 0.0  ;;  %v3503_v48 = vadd.f32 %v1503_v44, %v302_v24  ;;  %v3507_v49 = vadd.f32 %v1675_v45, %v310_v25  ;;  %v3986_v22 = vld [vmem:[#allocation7 + $0x280] ss:$16 sps:$4 sm:$0xff]   ;;  %v3994_v24 = vld [vmem:[#allocation7 + $0x2a4] ss:$16 sps:$4 sm:$0xff]  }
 0x1f0   :  { %v1710_v50 = vmul.f32 %v1699_v31, %v1680_v41  ;;  %v1682_v51 = vmax.f32 %v3502_v42, 0.0  ;;  %v1684_v52 = vmax.f32 %v3506_v43, 0.0  ;;  %v1708_v55 = vmul.f32 %v1691_v29, %v1678_v40  ;;  %v3997_v25 = vld [vmem:[#allocation7 + $0x2ac] ss:$16 sps:$4 sm:$0xff]   ;;  %v4000_v28 = vld [vmem:[#allocation7 + $0x2c4] ss:$16 sps:$4 sm:$0xff]  }
 0x1f1   :  { %v1683_v53 = vmax.f32 %v3503_v48, 0.0  ;;  %v1685_v54 = vmax.f32 %v3507_v49, 0.0  ;;  %v1709_v58 = vmul.f32 %v1695_v35, %v1679_v46  ;;  %v1711_v59 = vmul.f32 %v1703_v37, %v1681_v47  ;;  %v3998_v30 = vld [vmem:[#allocation7 + $0x2c0] ss:$16 sps:$4 sm:$0xff]   ;;  %v4012_v36 = vld [vmem:[#allocation7 + $0x304] ss:$16 sps:$4 sm:$0xff]  }
 0x1f2   :  { %v1712_v56 = vmul.f32 %v1691_v29, %v1682_v51  ;;  %v1714_v57 = vmul.f32 %v1699_v31, %v1684_v52  ;;  %v4003_v29 = vld [vmem:[#allocation7 + $0x2cc] ss:$16 sps:$4 sm:$0xff]   ;;  %v4001_v31 = vld [vmem:[#allocation7 + $0x2c8] ss:$16 sps:$4 sm:$0xff]   ;;  %v4004_v34 = vld [vmem:[#allocation7 + $0x2e0] ss:$16 sps:$4 sm:$0xff]  }
 0x1f3   :  { %v1713_v60 = vmul.f32 %v1695_v35, %v1683_v53  ;;  %v1715_v61 = vmul.f32 %v1703_v37, %v1685_v54  ;;  %v4007_v35 = vld [vmem:[#allocation7 + $0x2e8] ss:$16 sps:$4 sm:$0xff]   ;;  %v4015_v37 = vld [vmem:[#allocation7 + $0x30c] ss:$16 sps:$4 sm:$0xff]   ;;  %v4010_v38 = vld [vmem:[#allocation7 + $0x300] ss:$16 sps:$4 sm:$0xff]  }
 0x1f4   :  { %v1716_v62 = vpack.c.bf16 %v1712_v56, %v1708_v55  ;;  %v4355_v63 = vpack.c.bf16 %v1714_v57, %v1710_v50  ;;  %v4013_v39 = vld [vmem:[#allocation7 + $0x308] ss:$16 sps:$4 sm:$0xff]   ;;  %v4018_v40 = vld [vmem:[#allocation7 + $0x324] ss:$16 sps:$4 sm:$0xff]   ;;  %v4021_v41 = vld [vmem:[#allocation7 + $0x32c] ss:$16 sps:$4 sm:$0xff]  }
 0x1f5   :  { %v1717_v0 = vpack.c.bf16 %v1713_v60, %v1709_v58  ;;  %v1719_v3 = vpack.c.bf16 %v1715_v61, %v1711_v59  ;;  %v4016_v42 = vld [vmem:[#allocation7 + $0x320] ss:$16 sps:$4 sm:$0xff]   ;;  %v4019_v43 = vld [vmem:[#allocation7 + $0x328] ss:$16 sps:$4 sm:$0xff]   ;;  %v4024_v44 = vld [vmem:[#allocation7 + $0x344] ss:$16 sps:$4 sm:$0xff]  }
 0x1f6   :  { %v4027_v45 = vld [vmem:[#allocation7 + $0x34c] ss:$16 sps:$4 sm:$0xff]   ;;  %v4022_v46 = vld [vmem:[#allocation7 + $0x340] ss:$16 sps:$4 sm:$0xff]   ;;  %v4025_v47 = vld [vmem:[#allocation7 + $0x348] ss:$16 sps:$4 sm:$0xff]  }
 0x1f7   :  { %2542 = vmatprep.mubr.bf16.mxu0 %v1717_v0  ;;  %2628 = vmatprep.mubr.bf16.mxu1 %v1717_v0  ;;  %v4030_v48 = vld [vmem:[#allocation7 + $0x364] ss:$16 sps:$4 sm:$0xff]   ;;  %v4033_v49 = vld [vmem:[#allocation7 + $0x36c] ss:$16 sps:$4 sm:$0xff]   ;;  %v4028_v50 = vld [vmem:[#allocation7 + $0x360] ss:$16 sps:$4 sm:$0xff]  }
 0x1f8   :  { %2543 = vmatmul.mubr.bf16.vlgmr.msra.gmra.mrb[4].mxu0 %v1716_v62  ;;  %2629 = vmatmul.mubr.bf16.vlgmr.msra.gmra.mrb[4].mxu1 %v1716_v62  ;;  %v4031_v51 = vld [vmem:[#allocation7 + $0x368] ss:$16 sps:$4 sm:$0xff]   ;;  %v4036_v52 = vld [vmem:[#allocation7 + $0x384] ss:$16 sps:$4 sm:$0xff]   ;;  %v4039_v53 = vld [vmem:[#allocation7 + $0x38c] ss:$16 sps:$4 sm:$0xff]  }
 0x1f9   :  { %2554 = vmatpush1.bf16.msra.mxu0 %v3962_v1  ;;  %2640 = vmatpush1.bf16.msra.mxu1 %v3965_v2  ;;  %v4034_v54 = vld [vmem:[#allocation7 + $0x380] ss:$16 sps:$4 sm:$0xff]   ;;  %v4037_v55 = vld [vmem:[#allocation7 + $0x388] ss:$16 sps:$4 sm:$0xff]   ;;  %v4042_v56 = vld [vmem:[#allocation7 + $0x3a4] ss:$16 sps:$4 sm:$0xff]  }
 0x1fa   :  { %2585 = vmatprep.mubr.bf16.mxu0 %v1719_v3  ;;  %2671 = vmatprep.mubr.bf16.mxu1 %v1719_v3  ;;  %v4045_v57 = vld [vmem:[#allocation7 + $0x3ac] ss:$16 sps:$4 sm:$0xff]   ;;  %v4040_v58 = vld [vmem:[#allocation7 + $0x3a0] ss:$16 sps:$4 sm:$0xff]   ;;  %v4043_v59 = vld [vmem:[#allocation7 + $0x3a8] ss:$16 sps:$4 sm:$0xff]  }
 0x1fb   :  { %2555 = vmatprep.subr.bf16.mxu0 %v3970_v4  ;;  %2641 = vmatprep.subr.bf16.mxu1 %v3973_v5  ;;  %v4048_v60 = vld [vmem:[#allocation7 + $0x3c4] ss:$16 sps:$4 sm:$0xff]   ;;  %v4051_v61 = vld [vmem:[#allocation7 + $0x3cc] ss:$16 sps:$4 sm:$0xff]   ;;  %v4046_v62 = vld [vmem:[#allocation7 + $0x3c0] ss:$16 sps:$4 sm:$0xff]  }
 0x1fc   :  { %v4049_v0 = vld [vmem:[#allocation7 + $0x3c8] ss:$16 sps:$4 sm:$0xff]   ;;  %v4054_v1 = vld [vmem:[#allocation7 + $0x3e4] ss:$16 sps:$4 sm:$0xff]   ;;  %v4057_v2 = vld [vmem:[#allocation7 + $0x3ec] ss:$16 sps:$4 sm:$0xff]  }
 0x1fd   :  { %2556 = vmatpush1.bf16.msra.mxu0 %v3968_v6  ;;  %2642 = vmatpush1.bf16.msra.mxu1 %v3971_v7  ;;  %v4052_v3 = vld [vmem:[#allocation7 + $0x3e0] ss:$16 sps:$4 sm:$0xff]   ;;  %v4055_v4 = vld [vmem:[#allocation7 + $0x3e8] ss:$16 sps:$4 sm:$0xff]  }
 0x1fe   :  { %2557 = vmatprep.subr.bf16.mxu0 %v3976_v8  ;;  %2643 = vmatprep.subr.bf16.mxu1 %v3979_v9  ;;  %v4058_v5 = vld [vmem:[#allocation8 + $0x40] sm:$0xff]   ;;  %v4062_v9 = vld [vmem:[#allocation8 + $0x48] sm:$0xff]  }
 0x1ff   :  { %v4059_v6 = vld [vmem:[#allocation8 + $0xc0] sm:$0xff]  }
 0x200   :  { %v4060_v7 = vld [vmem:[#allocation8] sm:$0xff]  }
 0x201   :  { %2558 = vmatpush1.bf16.msra.mxu0 %v3974_v10  ;;  %2644 = vmatpush1.bf16.msra.mxu1 %v3977_v11  ;;  %v4061_v8 = vld [vmem:[#allocation8 + $0x80] sm:$0xff]   ;;  %v4063_v10 = vld [vmem:[#allocation8 + $0xc8] sm:$0xff]  }
 0x202   :  { %2559 = vmatprep.subr.bf16.mxu0 %v3982_v12  ;;  %2645 = vmatprep.subr.bf16.mxu1 %v3985_v13  ;;  %v4064_v11 = vld [vmem:[#allocation8 + $0x8] sm:$0xff]   ;;  %v4066_v13 = vld [vmem:[#allocation8 + $0x50] sm:$0xff]  }
 0x203   :  { %v4065_v12 = vld [vmem:[#allocation8 + $0x88] sm:$0xff]  }
 0x205   :  { %2560 = vmatpush1.bf16.msra.mxu0 %v3980_v14  ;;  %2646 = vmatpush1.bf16.msra.mxu1 %v3983_v15  ;;  %v4067_v14 = vld [vmem:[#allocation8 + $0xd0] sm:$0xff]  }
 0x206   :  { %2561 = vmatprep.subr.bf16.mxu0 %v3988_v18  ;;  %2647 = vmatprep.subr.bf16.mxu1 %v3991_v21  ;;  %v4068_v15 = vld [vmem:[#allocation8 + $0x10] sm:$0xff]   ;;  %v4070_v21 = vld [vmem:[#allocation8 + $0x58] sm:$0xff]  }
 0x207   :  { %v4069_v18 = vld [vmem:[#allocation8 + $0x90] sm:$0xff]  }
 0x209   :  { %2562 = vmatpush1.bf16.msra.mxu0 %v3986_v22  ;;  %2648 = vmatpush1.bf16.msra.mxu1 %v3989_v23  ;;  %v4071_v22 = vld [vmem:[#allocation8 + $0xd8] sm:$0xff]  }
 0x20a   :  { %2563 = vmatprep.subr.bf16.mxu0 %v3994_v24  ;;  %2649 = vmatprep.subr.bf16.mxu1 %v3997_v25  ;;  %v4072_v23 = vld [vmem:[#allocation8 + $0x18] sm:$0xff]   ;;  %v4074_v24 = vld [vmem:[#allocation8 + $0x60] sm:$0xff]  }
 0x20b   :  { %v4075_v25 = vld [vmem:[#allocation8 + $0xe0] sm:$0xff]  }
 0x20d   :  { %2564 = vmatpush1.bf16.msra.mxu0 %v3992_v26  ;;  %2650 = vmatpush1.bf16.msra.mxu1 %v3995_v27  ;;  %v4076_v26 = vld [vmem:[#allocation8 + $0x20] sm:$0xff]  }
 0x20e   :  { %2565 = vmatprep.subr.bf16.mxu0 %v4000_v28  ;;  %2651 = vmatprep.subr.bf16.mxu1 %v4003_v29  ;;  %v4077_v27 = vld [vmem:[#allocation8 + $0xa0] sm:$0xff]   ;;  %v4078_v28 = vld [vmem:[#allocation8 + $0x68] sm:$0xff]  }
 0x20f   :  { %v4079_v29 = vld [vmem:[#allocation8 + $0xe8] sm:$0xff]  }
 0x211   :  { %2566 = vmatpush1.bf16.msra.mxu0 %v3998_v30  ;;  %2652 = vmatpush1.bf16.msra.mxu1 %v4001_v31  ;;  %v4080_v30 = vld [vmem:[#allocation8 + $0x28] sm:$0xff]  }
 0x212   :  { %2567 = vmatprep.subr.bf16.mxu0 %v4006_v32  ;;  %2653 = vmatprep.subr.bf16.mxu1 %v4009_v33  ;;  %v4081_v31 = vld [vmem:[#allocation8 + $0xa8] sm:$0xff]   ;;  %v4082_v32 = vld [vmem:[#allocation8 + $0x70] sm:$0xff]  }
 0x213   :  { %v4083_v33 = vld [vmem:[#allocation8 + $0xf0] sm:$0xff]  }
 0x215   :  { %2568 = vmatpush1.bf16.msra.mxu0 %v4004_v34  ;;  %2654 = vmatpush1.bf16.msra.mxu1 %v4007_v35  ;;  %v4084_v34 = vld [vmem:[#allocation8 + $0x30] sm:$0xff]  }
 0x216   :  { %2569 = vmatprep.subr.bf16.mxu0 %v4012_v36  ;;  %2655 = vmatprep.subr.bf16.mxu1 %v4015_v37  ;;  %v4085_v35 = vld [vmem:[#allocation8 + $0xb0] sm:$0xff]   ;;  %v4086_v36 = vld [vmem:[#allocation8 + $0x78] sm:$0xff]  }
 0x217   :  { %v4087_v37 = vld [vmem:[#allocation8 + $0xf8] sm:$0xff]  }
 0x219   :  { %2570 = vmatpush1.bf16.msra.mxu0 %v4010_v38  ;;  %2656 = vmatpush1.bf16.msra.mxu1 %v4013_v39  ;;  %v4088_v38 = vld [vmem:[#allocation8 + $0x38] sm:$0xff]  }
 0x21a   :  { %2571 = vmatprep.subr.bf16.mxu0 %v4018_v40  ;;  %2657 = vmatprep.subr.bf16.mxu1 %v4021_v41  ;;  %v4089_v39 = vld [vmem:[#allocation8 + $0xb8] sm:$0xff]   ;;  %v1848_v40 = vld [vmem:[%s4393_s5] sm:$0xf] }
 0x21b   :  { %v1853_v41 = vrot.slane %v1848_v40, %v4333_v16 }
 0x21d   :  { %2572 = vmatpush1.bf16.msra.mxu0 %v4016_v42  ;;  %2658 = vmatpush1.bf16.msra.mxu1 %v4019_v43  ;;  %v1861_v42 = vrot.slane %v1848_v40, %v4335_v17  ;;  %v2690_v43 = vld [vmem:[%s4394_s6] sm:$0xf] }
 0x21e   :  { %2573 = vmatprep.subr.bf16.mxu0 %v4024_v44  ;;  %2659 = vmatprep.subr.bf16.mxu1 %v4027_v45  ;;  %v1857_v44 = vrot.slane %v1848_v40, %v4340_v19  ;;  %v1865_v45 = vrot.slane %v1848_v40, %v4342_v20 }
 0x221   :  { %2574 = vmatpush1.bf16.msra.mxu0 %v4022_v46  ;;  %2660 = vmatpush1.bf16.msra.mxu1 %v4025_v47 }
 0x222   :  { %2575 = vmatprep.subr.bf16.mxu0 %v4030_v48  ;;  %2661 = vmatprep.subr.bf16.mxu1 %v4033_v49  ;;  %v2695_v49 = vrot.slane %v2690_v43, %v4333_v16 }
 0x225   :  { %2576 = vmatpush1.bf16.msra.mxu0 %v4028_v50  ;;  %2662 = vmatpush1.bf16.msra.mxu1 %v4031_v51  ;;  %v2703_v51 = vrot.slane %v2690_v43, %v4335_v17 }
 0x226   :  { %2577 = vmatprep.subr.bf16.mxu0 %v4036_v52  ;;  %2663 = vmatprep.subr.bf16.mxu1 %v4039_v53 }
 0x229   :  { %2578 = vmatpush1.bf16.msra.mxu0 %v4034_v54  ;;  %2664 = vmatpush1.bf16.msra.mxu1 %v4037_v55  ;;  %v2699_v55 = vrot.slane %v2690_v43, %v4340_v19 }
 0x22a   :  { %2579 = vmatprep.subr.bf16.mxu0 %v4042_v56  ;;  %2665 = vmatprep.subr.bf16.mxu1 %v4045_v57  ;;  %v2707_v57 = vrot.slane %v2690_v43, %v4342_v20 }
 0x22d   :  { %2580 = vmatpush1.bf16.msra.mxu0 %v4040_v58  ;;  %2666 = vmatpush1.bf16.msra.mxu1 %v4043_v59 }
 0x22e   :  { %2581 = vmatprep.subr.bf16.mxu0 %v4048_v60  ;;  %2667 = vmatprep.subr.bf16.mxu1 %v4051_v61 }
 0x231   :  { %2582 = vmatpush1.bf16.msra.mxu0 %v4046_v62  ;;  %2668 = vmatpush1.bf16.msra.mxu1 %v4049_v0 }
 0x232   :  { %2583 = vmatprep.subr.bf16.mxu0 %v4054_v1  ;;  %2669 = vmatprep.subr.bf16.mxu1 %v4057_v2 }
 0x235   :  { %2584 = vmatpush1.bf16.msra.mxu0 %v4052_v3  ;;  %2670 = vmatpush1.bf16.msra.mxu1 %v4055_v4 }
 0x236   :  { %3456 = vmatprep.subr.bf16.mxu0 %v4058_v5  ;;  %3478 = vmatprep.subr.bf16.mxu1 %v4059_v6 }
 0x238   :  { %2586 = vmatmul.mubr.bf16.vlgmr.msra.gmra.mrb[4].mxu0 %v4355_v63  ;;  %2672 = vmatmul.mubr.bf16.vlgmr.msra.gmra.mrb[4].mxu1 %v4355_v63  ;;  %v4073_v63 = vld [vmem:[#allocation8 + $0x98] sm:$0xff]  }
 0x239   :  { %3457 = vmatpush3.bf16.msra.mxu0 %v4060_v7  ;;  %3479 = vmatpush3.bf16.msra.mxu1 %v4061_v8 }
 0x23a   :  { %3458 = vmatprep.subr.bf16.mxu0 %v4062_v9  ;;  %3480 = vmatprep.subr.bf16.mxu1 %v4063_v10 }
 0x23d   :  { %3459 = vmatpush3.bf16.msra.mxu0 %v4064_v11  ;;  %3481 = vmatpush3.bf16.msra.mxu1 %v4065_v12 }
 0x23e   :  { %3460 = vmatprep.subr.bf16.mxu0 %v4066_v13  ;;  %3482 = vmatprep.subr.bf16.mxu1 %v4067_v14 }
 0x241   :  { %3461 = vmatpush3.bf16.msra.mxu0 %v4068_v15  ;;  %3483 = vmatpush3.bf16.msra.mxu1 %v4069_v18 }
 0x242   :  { %3462 = vmatprep.subr.bf16.mxu0 %v4070_v21  ;;  %3484 = vmatprep.subr.bf16.mxu1 %v4071_v22 }
 0x245   :  { %3463 = vmatpush3.bf16.msra.mxu0 %v4072_v23  ;;  %3485 = vmatpush3.bf16.msra.mxu1 %v4073_v63 }
 0x246   :  { %3464 = vmatprep.subr.bf16.mxu0 %v4074_v24  ;;  %3486 = vmatprep.subr.bf16.mxu1 %v4075_v25  ;;  %v3423_v24 = vld [vmem:[%s4396_s8] ss:$0 sm:$0xff]  ;;  %s4178_s8 = scalar_lea.vmem %s3077_s26, 256 }
 0x247   :  { %p4179_p4 = scmp.ne.s32.totalorder %s3077_s26, %s4178_s8  ;;  %p4184_p6 = scmp.lt.s32.totalorder %s4178_s8, %s4178_s8 }
 0x249   :  { %3465 = vmatpush3.bf16.msra.mxu0 %v4076_v26  ;;  %3487 = vmatpush3.bf16.msra.mxu1 %v4077_v27  ;;  %p4185_p7 = por %p4184_p6, %p4183_p5 }
 0x24a   :  { %3466 = vmatprep.subr.bf16.mxu0 %v4078_v28  ;;  %3488 = vmatprep.subr.bf16.mxu1 %v4079_v29 }
 0x24b   :  { %p4186_p8 = pnand %p4185_p7, %p4179_p4 }
 0x24d   :  { %3467 = vmatpush3.bf16.msra.mxu0 %v4080_v30  ;;  %3489 = vmatpush3.bf16.msra.mxu1 %v4081_v31 }
 0x24e   :  { %3468 = vmatprep.subr.bf16.mxu0 %v4082_v32  ;;  %3490 = vmatprep.subr.bf16.mxu1 %v4083_v33 }
 0x251   :  { %3469 = vmatpush3.bf16.msra.mxu0 %v4084_v34  ;;  %3491 = vmatpush3.bf16.msra.mxu1 %v4085_v35 }
 0x252   :  { %3470 = vmatprep.subr.bf16.mxu0 %v4086_v36  ;;  %3492 = vmatprep.subr.bf16.mxu1 %v4087_v37 }
 0x255   :  { %3471 = vmatpush3.bf16.msra.mxu0 %v4088_v38  ;;  %3493 = vmatpush3.bf16.msra.mxu1 %v4089_v39 }
 0x30b   :  { %v2587_v46 = vpop.f32.mrb[4].mxu0  ;;  %v2673_v47 = vpop.f32.mrb[4].mxu1 }
 0x30c   :  { %v3508_v48 = vadd.f32 %v2587_v46, %v1853_v41  ;;  %v3512_v50 = vadd.f32 %v2673_v47, %v1861_v42  ;;  %v2589_v52 = vpop.f32.mrb[5].mxu0  ;;  %v2675_v53 = vpop.f32.mrb[5].mxu1 }
 0x30d   :  { %v3509_v54 = vadd.f32 %v2589_v52, %v1857_v44  ;;  %v3513_v56 = vadd.f32 %v2675_v53, %v1865_v45  ;;  %v2591_v58 = vpop.f32.mrb[6].mxu0  ;;  %v2677_v59 = vpop.f32.mrb[6].mxu1 }
 0x30e   :  { %v2682_v60 = vmax.f32 %v3508_v48, 0.0  ;;  %v2684_v61 = vmax.f32 %v3512_v50, 0.0  ;;  %v3510_v62 = vadd.f32 %v2591_v58, %v1853_v41  ;;  %v3514_v0 = vadd.f32 %v2677_v59, %v1861_v42  ;;  %v2593_v1 = vpop.f32.mrb[7].mxu0  ;;  %v2679_v2 = vpop.f32.mrb[7].mxu1 }
 0x30f   :  { %v2683_v16 = vmax.f32 %v3509_v54, 0.0  ;;  %v2685_v3 = vmax.f32 %v3513_v56, 0.0  ;;  %v3511_v4 = vadd.f32 %v2593_v1, %v1857_v44  ;;  %v3515_v17 = vadd.f32 %v2679_v2, %v1865_v45 }
 0x310   :  { %v2686_v5 = vmax.f32 %v3510_v62, 0.0  ;;  %v2688_v6 = vmax.f32 %v3514_v0, 0.0  ;;  %v2712_v19 = vmul.f32 %v2695_v49, %v2682_v60  ;;  %v2714_v9 = vmul.f32 %v2703_v51, %v2684_v61 }
 0x311   :  { %v2687_v7 = vmax.f32 %v3511_v4, 0.0  ;;  %v2689_v8 = vmax.f32 %v3515_v17, 0.0  ;;  %v2713_v11 = vmul.f32 %v2699_v55, %v2683_v16  ;;  %v2715_v12 = vmul.f32 %v2707_v57, %v2685_v3 }
 0x312   :  { %v2716_v10 = vmul.f32 %v2695_v49, %v2686_v5  ;;  %v2718_v20 = vmul.f32 %v2703_v51, %v2688_v6 }
 0x313   :  { %v2717_v13 = vmul.f32 %v2699_v55, %v2687_v7  ;;  %v2719_v14 = vmul.f32 %v2707_v57, %v2689_v8 }
 0x314   :  { %v2720_v15 = vpack.c.bf16 %v2716_v10, %v2712_v19  ;;  %v2722_v18 = vpack.c.bf16 %v2718_v20, %v2714_v9 }
 0x315   :  { %v2721_v21 = vpack.c.bf16 %v2717_v13, %v2713_v11  ;;  %v2723_v22 = vpack.c.bf16 %v2719_v14, %v2715_v12 }
 0x317   :  { %3019 = vmatprep.mubr.bf16.mxu0 %v2721_v21  ;;  %3060 = vmatprep.mubr.bf16.mxu1 %v2723_v22 }
 0x318   :  { %3020 = vmatmul.mubr.bf16.vlgmr.msra.gmra.mrb[8].mxu0 %v2720_v15  ;;  %3061 = vmatmul.mubr.bf16.vlgmr.msra.gmra.mrb[8].mxu1 %v2722_v18 }
 0x3eb   :  { %v3472_v23 = vpop.f32.mrb[8].mxu0  ;;  %v3494_v63 = vpop.f32.mrb[8].mxu1 }
 0x3ec   :  { %v3473_v25 = vpop.f32.mrb[9].mxu0  ;;  %v3495_v26 = vpop.f32.mrb[9].mxu1 }
 0x3ed   :  { %v3474_v27 = vadd.f32 %v3473_v25, %v3472_v23  ;;  %v3496_v28 = vadd.f32 %v3495_v26, %v3494_v63  ;;  %v3475_v29 = vpop.f32.mrb[10].mxu0  ;;  %v3497_v30 = vpop.f32.mrb[10].mxu1 }
 0x3ee   :  { %v3476_v31 = vpop.f32.mrb[11].mxu0  ;;  %v3498_v32 = vpop.f32.mrb[11].mxu1 }
 0x3ef   :  { %v3022_v33 = vadd.f32 %v3474_v27, %v3423_v24  ;;  %v3477_v34 = vadd.f32 %v3476_v31, %v3475_v29  ;;  %v3499_v35 = vadd.f32 %v3498_v32, %v3497_v30 }
 0x3f1   :  { %v3063_v36 = vadd.f32 %v3496_v28, %v3022_v33  ;;  %v3025_v37 = vadd.f32 %v3477_v34, %v3423_v24 }
 0x3f3   :  { %3069 = vst [vmem:[#allocation10] sm:$0xff] %v3063_v36  ;;  %v3066_v38 = vadd.f32 %v3499_v35, %v3025_v37 }
 0x3f5   :  { %3070 = vst [vmem:[#allocation10 + $0x8] sm:$0xff] %v3066_v38 }
 0x3f6   :  { %4189 = shalt.err (!%p4186_p8)
}
 0x3f7   :  { %s4190_s0 = scalar_lea.hbm %s4397_s9, 256 }
 0x3f8   :  { %p4191_p9 = scmp.ne.s32.totalorder %s4397_s9, %s4190_s0  ;;  %p4194_p10 = scmp.lt.u32.totalorder %s4190_s0, %s4397_s9 }
 0x3fa   :  { %p4196_p11 = pnand %p4194_p10, %p4191_p9 }
 0x3fc   :  { %4199 = shalt.err (!%p4196_p11)
}
 0x3fd   :  { %s4220_s12 = smov 128   ;;  %s4221_s1 = smov 8  }
 0x3fe   :  { %3082 = dma.vmem_to_hbm [thread:$0]  %s3077_s26, 256, %s4397_s9, [#allocation4], %s4220_s12, %s4220_s12, %s4221_s1  }
 0x3ff   :  { %4206 = dma.done.wait [#allocation4], 256  }
 0x400   :  { %4207 = vsyncadd [#allocation4], 4294967040 }
 0x401   :  { %3086 = vsyncpa [#allocation3], 1 }
 0x402   :  { %3087 = vsyncpa [#allocation6], 1 }
 0x403   :  { %3088 = vsyncpa [#allocation9], 1 }
 0x404   :  { %3089 = vsyncpa [#allocation4], 1 }

</bundles_post_ra>
